<compile_context>
chip_gen: v7x
topology: tpu7x:2x2x1
jax: 0.10.0
libtpu: 0.0.40
codegen_flags: <defaults>
</compile_context>

<pallas_src>
import functools

import jax
import jax.numpy as jnp
from jax import lax
from jax.experimental import pallas as pl
from jax.experimental.pallas import tpu as pltpu
import numpy as np

BN_EPS = 1e-5


def basic_block_kernel(x_ref, w1_ref, s1_ref, b1_ref,
                       w2_ref, s2_ref, b2_ref, mask_ref,
                       out_ref, *, wp2, lanes, mm_dtype):
    """Fused BasicBlock forward for one batch chunk (images packed on lanes).

      x_ref   : (Cin, L) f32   zero-padded inputs; L = bblk * mfp lanes, each
                               image occupies one mfp-wide, lane-dense segment
      w1_ref  : (3, 3, Cp, Cin) conv1 weights (ky, kx, out, in), mm_dtype
      s1/b1   : (Cp, 1) f32     folded BN1 scale / bias
      w2_ref  : (3, 3, Cp, Cp)  conv2 weights, mm_dtype
      s2/b2   : (Cp, 1) f32     folded BN2 scale / bias
      mask_ref: (1, L) f32      1.0 on flat positions that are real output
                                pixels, 0.0 on padding / garbage positions
      out_ref : (Cp, L)         output in the same flat layout as the input
    """
    x_f32 = x_ref[...]                        # (Cin, L)
    x_mm = x_f32.astype(mm_dtype)

    def conv3x3(inp, w_ref, center):
        # out[:, p] += w[ky,kx] @ inp[:, p + (ky-center)*wp2 + (kx-center)]
        # The tap shift is a lane rotation of the f32 product (XLU slot).
        # Valid-pixel taps stay inside their own image's segment; wrapped
        # lanes only ever read masked-zero / discarded positions.
        acc = None
        for ky in range(3):
            for kx in range(3):
                prod = jnp.dot(w_ref[ky, kx], inp,
                               preferred_element_type=jnp.float32)
                shift = (-((ky - center) * wp2 + (kx - center))) % lanes
                if shift:
                    prod = pltpu.roll(prod, shift=shift, axis=1)
                acc = prod if acc is None else acc + prod
        return acc

    # conv1 reads the explicitly zero-padded input: output pixel (h, w) lives
    # at flat position h*wp2 + w and needs taps at (h+ky, w+kx)  -> center=0.
    acc1 = conv3x3(x_mm, w1_ref, center=0)
    mid = jnp.maximum(acc1 * s1_ref[...] + b1_ref[...], 0.0)     # BN1 + ReLU
    # Zero every flat position that is not a real output pixel so it acts as
    # conv2's zero padding (and so lane wrap-around of the rolls reads zeros).
    mid = mid * mask_ref[...]

    # conv2 reads `mid`, whose valid pixel (a, b) sits at flat a*wp2 + b, so
    # the taps are at (h + ky - 1, w + kx - 1)  -> center=1.
    acc2 = conv3x3(mid.astype(mm_dtype), w2_ref, center=1)
    out = acc2 * s2_ref[...] + b2_ref[...]                       # BN2 (f32)

    # Residual: identity pixel (h, w) is the padded input at (h+1, w+1),
    # i.e. the input rolled by -(wp2 + 1) lanes.  Added in f32.
    ident = pltpu.roll(x_f32, shift=(-(wp2 + 1)) % lanes, axis=1)
    out_ref[...] = jnp.maximum(out + ident, 0.0).astype(out_ref.dtype)


def basic_block_forward(x_nchw, params, *, mm_dtype=jnp.bfloat16,
                        max_block_lanes=2048):
    """BasicBlock forward (stride=1, downsample=None).  Input/output NCHW."""
    N, C, H, W = x_nchw.shape
    Cp = params["conv1_w"].shape[0]
    if not (params["conv1_w"].shape[1] == C and Cp == C):
        raise ValueError("stride=1 / downsample=None requires inplanes == planes")
    # TODO(synk): stride != 1 and the downsample branch are not implemented
    # (module defaults are stride=1, downsample=None).

    wp2 = W + 2
    mf = (H + 2) * wp2
    mfp = ((mf + 127) // 128) * 128        # lane-pad flat spatial axis to 128*k

    # Pack `bblk` images side by side on the lane axis per grid step.
    bblk = min(N, max(1, max_block_lanes // mfp))
    n_chunks = -(-N // bblk)
    npad = n_chunks * bblk
    lanes = bblk * mfp

    # Zero-pad spatially in NCHW, flatten the padded image onto the lane axis,
    # then put the (padded) batch on the lane axis too: (C, npad * mfp).
    xpad = jnp.pad(x_nchw.astype(jnp.float32),
                   ((0, npad - N), (0, 0), (1, 1), (1, 1)))
    xflat = xpad.reshape(npad, C, mf)
    xflat = jnp.pad(xflat, ((0, 0), (0, 0), (0, mfp - mf)))
    xlanes = jnp.transpose(xflat, (1, 0, 2)).reshape(C, npad * mfp)

    # PyTorch conv weight (out, in, kh, kw) -> (ky, kx, out, in); bf16 MXU inputs.
    w1 = jnp.transpose(params["conv1_w"], (2, 3, 0, 1)).astype(mm_dtype)
    w2 = jnp.transpose(params["conv2_w"], (2, 3, 0, 1)).astype(mm_dtype)

    # TODO(synk): BatchNorm is folded in inference mode (running stats);
    # training-mode batch statistics are not reproduced.
    def fold_bn(gamma, beta, mean, var):
        scale = (gamma / jnp.sqrt(var + BN_EPS)).astype(jnp.float32)
        bias = (beta - mean * scale).astype(jnp.float32)
        return scale.reshape(Cp, 1), bias.reshape(Cp, 1)

    s1, b1 = fold_bn(params["bn1_gamma"], params["bn1_beta"],
                     params["bn1_mean"], params["bn1_var"])
    s2, b2 = fold_bn(params["bn2_gamma"], params["bn2_beta"],
                     params["bn2_mean"], params["bn2_var"])

    # 1.0 exactly where the flat position corresponds to a real output pixel,
    # tiled across the bblk images of a chunk (pattern is per-image periodic).
    p = jnp.arange(mfp)
    mask1 = (((p // wp2) < H) & ((p % wp2) < W)).astype(jnp.float32)
    mask = jnp.tile(mask1, bblk).reshape(1, lanes)

    kernel = functools.partial(basic_block_kernel,
                               wp2=wp2, lanes=lanes, mm_dtype=mm_dtype)

    # NOTE: at these shapes a whole chunk fits VMEM with large headroom on
    # every generation (incl. v5e's 16 MiB scoped default).  For realistic
    # ResNet stages (e.g. 56x56x256) add a row-stripe grid axis with a 1-row
    # halo and set vmem_limit_bytes explicitly.
    out_lanes = pl.pallas_call(
        kernel,
        out_shape=jax.ShapeDtypeStruct((Cp, npad * mfp), x_nchw.dtype),
        grid_spec=pltpu.PrefetchScalarGridSpec(
            num_scalar_prefetch=0,
            grid=(n_chunks,),
            in_specs=[
                pl.BlockSpec((C, lanes), lambda i: (0, i)),
                pl.BlockSpec((3, 3, Cp, C), lambda i: (0, 0, 0, 0)),
                pl.BlockSpec((Cp, 1), lambda i: (0, 0)),
                pl.BlockSpec((Cp, 1), lambda i: (0, 0)),
                pl.BlockSpec((3, 3, Cp, Cp), lambda i: (0, 0, 0, 0)),
                pl.BlockSpec((Cp, 1), lambda i: (0, 0)),
                pl.BlockSpec((Cp, 1), lambda i: (0, 0)),
                pl.BlockSpec((1, lanes), lambda i: (0, 0)),
            ],
            out_specs=pl.BlockSpec((Cp, lanes), lambda i: (0, i)),
        ),
        compiler_params=pltpu.CompilerParams(
            dimension_semantics=("parallel",)),
    )(xlanes, w1, s1, b1, w2, s2, b2, mask)

    # Un-flatten: split batch off the lane axis, drop lane padding, then drop
    # the padded border rows/cols.
    out = out_lanes.reshape(Cp, npad, mfp).transpose(1, 0, 2)[:N, :, :mf]
    out = out.reshape(N, Cp, H + 2, wp2)[:, :, :H, :W]
    return out


def basic_block_reference(x, params, conv_dtype=jnp.float32):
    """Pure-JAX (XLA) reference, NCHW.  conv_dtype controls conv input dtype."""
    def conv(v, w):
        return lax.conv_general_dilated(
            v.astype(conv_dtype), w.astype(conv_dtype),
            window_strides=(1, 1), padding=((1, 1), (1, 1)),
            dimension_numbers=("NCHW", "OIHW", "NCHW"),
            preferred_element_type=jnp.float32)

    def bn(v, gamma, beta, mean, var):
        sh = (1, -1, 1, 1)
        return (v - mean.reshape(sh)) / jnp.sqrt(var.reshape(sh) + BN_EPS) \
            * gamma.reshape(sh) + beta.reshape(sh)

    out = conv(x, params["conv1_w"])
    out = bn(out, params["bn1_gamma"], params["bn1_beta"],
             params["bn1_mean"], params["bn1_var"])
    out = jnp.maximum(out, 0.0)
    out = conv(out, params["conv2_w"])
    out = bn(out, params["bn2_gamma"], params["bn2_beta"],
             params["bn2_mean"], params["bn2_var"])
    out = out + x
    return jnp.maximum(out, 0.0)


def make_params(inplanes, planes, key):
    ks = jax.random.split(key, 12)
    p = {
        "conv1_w": 0.1 * jax.random.normal(ks[0], (planes, inplanes, 3, 3), jnp.float32),
        "conv2_w": 0.1 * jax.random.normal(ks[1], (planes, planes, 3, 3), jnp.float32),
        "bn1_gamma": 1.0 + 0.1 * jax.random.normal(ks[2], (planes,), jnp.float32),
        "bn1_beta": 0.1 * jax.random.normal(ks[3], (planes,), jnp.float32),
        "bn1_mean": 0.1 * jax.random.normal(ks[4], (planes,), jnp.float32),
        "bn1_var": 1.0 + 0.1 * jnp.abs(jax.random.normal(ks[5], (planes,), jnp.float32)),
        "bn2_gamma": 1.0 + 0.1 * jax.random.normal(ks[6], (planes,), jnp.float32),
        "bn2_beta": 0.1 * jax.random.normal(ks[7], (planes,), jnp.float32),
        "bn2_mean": 0.1 * jax.random.normal(ks[8], (planes,), jnp.float32),
        "bn2_var": 1.0 + 0.1 * jnp.abs(jax.random.normal(ks[9], (planes,), jnp.float32)),
    }
    return p, ks[10]


if __name__ == "__main__":
    N, inplanes, planes, H, W = 2, 4, 4, 16, 16   # stride=1, downsample=None
    key = jax.random.PRNGKey(0)
    params, kx = make_params(inplanes, planes, key)
    x = jax.random.normal(kx, (N, inplanes, H, W), jnp.float32)

    out = jax.block_until_ready(basic_block_forward(x, params))
    assert out.shape == (N, planes, H, W)

    # Tight check vs a reference with matching bf16 conv-input numerics
    # (validates the roll/mask/index structure of the kernel).
    ref_bf16 = jax.block_until_ready(
        basic_block_reference(x, params, conv_dtype=jnp.bfloat16))
    np.testing.assert_allclose(np.asarray(out), np.asarray(ref_bf16),
                               rtol=5e-3, atol=5e-3)

    # Loose check vs the full-f32 module semantics (bf16 MXU inputs account
    # for the tolerance).
    ref_f32 = jax.block_until_ready(
        basic_block_reference(x, params, conv_dtype=jnp.float32))
    np.testing.assert_allclose(np.asarray(out), np.asarray(ref_f32),
                               rtol=5e-2, atol=5e-2)

    # Extra structural check: multiple grid steps + batch padding (N=3 with
    # 2 images per chunk -> 2 chunks, last one padded).
    key2 = jax.random.PRNGKey(1)
    x3 = jax.random.normal(key2, (3, inplanes, H, W), jnp.float32)
    out3 = jax.block_until_ready(
        basic_block_forward(x3, params, max_block_lanes=768))
    ref3 = jax.block_until_ready(
        basic_block_reference(x3, params, conv_dtype=jnp.bfloat16))
    np.testing.assert_allclose(np.asarray(out3), np.asarray(ref3),
                               rtol=5e-3, atol=5e-3)

    print("KERNEL_OK")
</pallas_src>

<mosaic_0001>
module attributes {stable_mosaic.version = 11 : i64} {
  func.func @basic_block_kernel(%arg0: i32, %arg1: memref<4x768xf32, #tpu.memory_space<vmem>>, %arg2: memref<3x3x4x4xbf16, #tpu.memory_space<vmem>>, %arg3: memref<4x1xf32, #tpu.memory_space<vmem>>, %arg4: memref<4x1xf32, #tpu.memory_space<vmem>>, %arg5: memref<3x3x4x4xbf16, #tpu.memory_space<vmem>>, %arg6: memref<4x1xf32, #tpu.memory_space<vmem>>, %arg7: memref<4x1xf32, #tpu.memory_space<vmem>>, %arg8: memref<1x768xf32, #tpu.memory_space<vmem>>, %arg9: memref<4x768xf32, #tpu.memory_space<vmem>>) attributes {dimension_semantics = [#tpu.dimension_semantics<parallel>], iteration_bounds = array<i64: 1>, scalar_prefetch = 0 : i64, scratch_operands = 0 : i64, tpu.core_type = #tpu.core_type<tc>, window_params = [{transform_indices = @transform_0, window_bounds = array<i64: 4, 768>}, {pipeline_mode = #tpu.pipeline_mode<synchronous>, transform_indices = @transform_1, window_bounds = array<i64: 3, 3, 4, 4>}, {pipeline_mode = #tpu.pipeline_mode<synchronous>, transform_indices = @transform_2, window_bounds = array<i64: 4, 1>}, {pipeline_mode = #tpu.pipeline_mode<synchronous>, transform_indices = @transform_3, window_bounds = array<i64: 4, 1>}, {pipeline_mode = #tpu.pipeline_mode<synchronous>, transform_indices = @transform_4, window_bounds = array<i64: 3, 3, 4, 4>}, {pipeline_mode = #tpu.pipeline_mode<synchronous>, transform_indices = @transform_5, window_bounds = array<i64: 4, 1>}, {pipeline_mode = #tpu.pipeline_mode<synchronous>, transform_indices = @transform_6, window_bounds = array<i64: 4, 1>}, {pipeline_mode = #tpu.pipeline_mode<synchronous>, transform_indices = @transform_7, window_bounds = array<i64: 1, 768>}, {transform_indices = @transform_8, window_bounds = array<i64: 4, 768>}]} {
    %c0 = arith.constant 0 : index
    %c0_0 = arith.constant 0 : index
    %0 = vector.load %arg1[%c0, %c0_0] : memref<4x768xf32, #tpu.memory_space<vmem>>, vector<4x768xf32>
    %1 = arith.truncf %0 : vector<4x768xf32> to vector<4x768xbf16>
    %c0_1 = arith.constant 0 : index
    %c0_2 = arith.constant 0 : index
    %c0_3 = arith.constant 0 : index
    %c0_4 = arith.constant 0 : index
    %2 = vector.load %arg2[%c0_1, %c0_2, %c0_3, %c0_4] : memref<3x3x4x4xbf16, #tpu.memory_space<vmem>>, vector<1x1x4x4xbf16>
    %3 = vector.shape_cast %2 : vector<1x1x4x4xbf16> to vector<4x4xbf16>
    %cst = arith.constant dense<0.000000e+00> : vector<4x768xf32>
    %4 = tpu.matmul %3, %1, %cst {dimension_numbers = #tpu.dot_dimension_numbers<[1], [0], [0], [1], [0, 0, 1, 1], [], []>} : vector<4x4xbf16>, vector<4x768xbf16>, vector<4x768xf32> -> vector<4x768xf32>
    %c0_5 = arith.constant 0 : index
    %c1 = arith.constant 1 : index
    %c0_6 = arith.constant 0 : index
    %c0_7 = arith.constant 0 : index
    %5 = vector.load %arg2[%c0_5, %c1, %c0_6, %c0_7] : memref<3x3x4x4xbf16, #tpu.memory_space<vmem>>, vector<1x1x4x4xbf16>
    %6 = vector.shape_cast %5 : vector<1x1x4x4xbf16> to vector<4x4xbf16>
    %cst_8 = arith.constant dense<0.000000e+00> : vector<4x768xf32>
    %7 = tpu.matmul %6, %1, %cst_8 {dimension_numbers = #tpu.dot_dimension_numbers<[1], [0], [0], [1], [0, 0, 1, 1], [], []>} : vector<4x4xbf16>, vector<4x768xbf16>, vector<4x768xf32> -> vector<4x768xf32>
    %c767_i32 = arith.constant 767 : i32
    %8 = tpu.dynamic_rotate %7 by %c767_i32 dim 1 : vector<4x768xf32>, i32 -> vector<4x768xf32>
    %9 = arith.addf %4, %8 : vector<4x768xf32>
    %c0_9 = arith.constant 0 : index
    %c2 = arith.constant 2 : index
    %c0_10 = arith.constant 0 : index
    %c0_11 = arith.constant 0 : index
    %10 = vector.load %arg2[%c0_9, %c2, %c0_10, %c0_11] : memref<3x3x4x4xbf16, #tpu.memory_space<vmem>>, vector<1x1x4x4xbf16>
    %11 = vector.shape_cast %10 : vector<1x1x4x4xbf16> to vector<4x4xbf16>
    %cst_12 = arith.constant dense<0.000000e+00> : vector<4x768xf32>
    %12 = tpu.matmul %11, %1, %cst_12 {dimension_numbers = #tpu.dot_dimension_numbers<[1], [0], [0], [1], [0, 0, 1, 1], [], []>} : vector<4x4xbf16>, vector<4x768xbf16>, vector<4x768xf32> -> vector<4x768xf32>
    %c766_i32 = arith.constant 766 : i32
    %13 = tpu.dynamic_rotate %12 by %c766_i32 dim 1 : vector<4x768xf32>, i32 -> vector<4x768xf32>
    %14 = arith.addf %9, %13 : vector<4x768xf32>
    %c1_13 = arith.constant 1 : index
    %c0_14 = arith.constant 0 : index
    %c0_15 = arith.constant 0 : index
    %c0_16 = arith.constant 0 : index
    %15 = vector.load %arg2[%c1_13, %c0_14, %c0_15, %c0_16] : memref<3x3x4x4xbf16, #tpu.memory_space<vmem>>, vector<1x1x4x4xbf16>
    %16 = vector.shape_cast %15 : vector<1x1x4x4xbf16> to vector<4x4xbf16>
    %cst_17 = arith.constant dense<0.000000e+00> : vector<4x768xf32>
    %17 = tpu.matmul %16, %1, %cst_17 {dimension_numbers = #tpu.dot_dimension_numbers<[1], [0], [0], [1], [0, 0, 1, 1], [], []>} : vector<4x4xbf16>, vector<4x768xbf16>, vector<4x768xf32> -> vector<4x768xf32>
    %c750_i32 = arith.constant 750 : i32
    %18 = tpu.dynamic_rotate %17 by %c750_i32 dim 1 : vector<4x768xf32>, i32 -> vector<4x768xf32>
    %19 = arith.addf %14, %18 : vector<4x768xf32>
    %c1_18 = arith.constant 1 : index
    %c1_19 = arith.constant 1 : index
    %c0_20 = arith.constant 0 : index
    %c0_21 = arith.constant 0 : index
    %20 = vector.load %arg2[%c1_18, %c1_19, %c0_20, %c0_21] : memref<3x3x4x4xbf16, #tpu.memory_space<vmem>>, vector<1x1x4x4xbf16>
    %21 = vector.shape_cast %20 : vector<1x1x4x4xbf16> to vector<4x4xbf16>
    %cst_22 = arith.constant dense<0.000000e+00> : vector<4x768xf32>
    %22 = tpu.matmul %21, %1, %cst_22 {dimension_numbers = #tpu.dot_dimension_numbers<[1], [0], [0], [1], [0, 0, 1, 1], [], []>} : vector<4x4xbf16>, vector<4x768xbf16>, vector<4x768xf32> -> vector<4x768xf32>
    %c749_i32 = arith.constant 749 : i32
    %23 = tpu.dynamic_rotate %22 by %c749_i32 dim 1 : vector<4x768xf32>, i32 -> vector<4x768xf32>
    %24 = arith.addf %19, %23 : vector<4x768xf32>
    %c1_23 = arith.constant 1 : index
    %c2_24 = arith.constant 2 : index
    %c0_25 = arith.constant 0 : index
    %c0_26 = arith.constant 0 : index
    %25 = vector.load %arg2[%c1_23, %c2_24, %c0_25, %c0_26] : memref<3x3x4x4xbf16, #tpu.memory_space<vmem>>, vector<1x1x4x4xbf16>
    %26 = vector.shape_cast %25 : vector<1x1x4x4xbf16> to vector<4x4xbf16>
    %cst_27 = arith.constant dense<0.000000e+00> : vector<4x768xf32>
    %27 = tpu.matmul %26, %1, %cst_27 {dimension_numbers = #tpu.dot_dimension_numbers<[1], [0], [0], [1], [0, 0, 1, 1], [], []>} : vector<4x4xbf16>, vector<4x768xbf16>, vector<4x768xf32> -> vector<4x768xf32>
    %c748_i32 = arith.constant 748 : i32
    %28 = tpu.dynamic_rotate %27 by %c748_i32 dim 1 : vector<4x768xf32>, i32 -> vector<4x768xf32>
    %29 = arith.addf %24, %28 : vector<4x768xf32>
    %c2_28 = arith.constant 2 : index
    %c0_29 = arith.constant 0 : index
    %c0_30 = arith.constant 0 : index
    %c0_31 = arith.constant 0 : index
    %30 = vector.load %arg2[%c2_28, %c0_29, %c0_30, %c0_31] : memref<3x3x4x4xbf16, #tpu.memory_space<vmem>>, vector<1x1x4x4xbf16>
    %31 = vector.shape_cast %30 : vector<1x1x4x4xbf16> to vector<4x4xbf16>
    %cst_32 = arith.constant dense<0.000000e+00> : vector<4x768xf32>
    %32 = tpu.matmul %31, %1, %cst_32 {dimension_numbers = #tpu.dot_dimension_numbers<[1], [0], [0], [1], [0, 0, 1, 1], [], []>} : vector<4x4xbf16>, vector<4x768xbf16>, vector<4x768xf32> -> vector<4x768xf32>
    %c732_i32 = arith.constant 732 : i32
    %33 = tpu.dynamic_rotate %32 by %c732_i32 dim 1 : vector<4x768xf32>, i32 -> vector<4x768xf32>
    %34 = arith.addf %29, %33 : vector<4x768xf32>
    %c2_33 = arith.constant 2 : index
    %c1_34 = arith.constant 1 : index
    %c0_35 = arith.constant 0 : index
    %c0_36 = arith.constant 0 : index
    %35 = vector.load %arg2[%c2_33, %c1_34, %c0_35, %c0_36] : memref<3x3x4x4xbf16, #tpu.memory_space<vmem>>, vector<1x1x4x4xbf16>
    %36 = vector.shape_cast %35 : vector<1x1x4x4xbf16> to vector<4x4xbf16>
    %cst_37 = arith.constant dense<0.000000e+00> : vector<4x768xf32>
    %37 = tpu.matmul %36, %1, %cst_37 {dimension_numbers = #tpu.dot_dimension_numbers<[1], [0], [0], [1], [0, 0, 1, 1], [], []>} : vector<4x4xbf16>, vector<4x768xbf16>, vector<4x768xf32> -> vector<4x768xf32>
    %c731_i32 = arith.constant 731 : i32
    %38 = tpu.dynamic_rotate %37 by %c731_i32 dim 1 : vector<4x768xf32>, i32 -> vector<4x768xf32>
    %39 = arith.addf %34, %38 : vector<4x768xf32>
    %c2_38 = arith.constant 2 : index
    %c2_39 = arith.constant 2 : index
    %c0_40 = arith.constant 0 : index
    %c0_41 = arith.constant 0 : index
    %40 = vector.load %arg2[%c2_38, %c2_39, %c0_40, %c0_41] : memref<3x3x4x4xbf16, #tpu.memory_space<vmem>>, vector<1x1x4x4xbf16>
    %41 = vector.shape_cast %40 : vector<1x1x4x4xbf16> to vector<4x4xbf16>
    %cst_42 = arith.constant dense<0.000000e+00> : vector<4x768xf32>
    %42 = tpu.matmul %41, %1, %cst_42 {dimension_numbers = #tpu.dot_dimension_numbers<[1], [0], [0], [1], [0, 0, 1, 1], [], []>} : vector<4x4xbf16>, vector<4x768xbf16>, vector<4x768xf32> -> vector<4x768xf32>
    %c730_i32 = arith.constant 730 : i32
    %43 = tpu.dynamic_rotate %42 by %c730_i32 dim 1 : vector<4x768xf32>, i32 -> vector<4x768xf32>
    %44 = arith.addf %39, %43 : vector<4x768xf32>
    %c0_43 = arith.constant 0 : index
    %c0_44 = arith.constant 0 : index
    %45 = vector.load %arg3[%c0_43, %c0_44] : memref<4x1xf32, #tpu.memory_space<vmem>>, vector<4x1xf32>
    %46 = vector.broadcast %45 : vector<4x1xf32> to vector<4x768xf32>
    %47 = arith.mulf %44, %46 : vector<4x768xf32>
    %c0_45 = arith.constant 0 : index
    %c0_46 = arith.constant 0 : index
    %48 = vector.load %arg4[%c0_45, %c0_46] : memref<4x1xf32, #tpu.memory_space<vmem>>, vector<4x1xf32>
    %49 = vector.broadcast %48 : vector<4x1xf32> to vector<4x768xf32>
    %50 = arith.addf %47, %49 : vector<4x768xf32>
    %cst_47 = arith.constant 0.000000e+00 : f32
    %51 = vector.broadcast %cst_47 : f32 to vector<4x768xf32>
    %52 = arith.maximumf %50, %51 : vector<4x768xf32>
    %c0_48 = arith.constant 0 : index
    %c0_49 = arith.constant 0 : index
    %53 = vector.load %arg8[%c0_48, %c0_49] : memref<1x768xf32, #tpu.memory_space<vmem>>, vector<1x768xf32>
    %54 = vector.broadcast %53 : vector<1x768xf32> to vector<4x768xf32>
    %55 = arith.mulf %52, %54 : vector<4x768xf32>
    %56 = arith.truncf %55 : vector<4x768xf32> to vector<4x768xbf16>
    %c0_50 = arith.constant 0 : index
    %c0_51 = arith.constant 0 : index
    %c0_52 = arith.constant 0 : index
    %c0_53 = arith.constant 0 : index
    %57 = vector.load %arg5[%c0_50, %c0_51, %c0_52, %c0_53] : memref<3x3x4x4xbf16, #tpu.memory_space<vmem>>, vector<1x1x4x4xbf16>
    %58 = vector.shape_cast %57 : vector<1x1x4x4xbf16> to vector<4x4xbf16>
    %cst_54 = arith.constant dense<0.000000e+00> : vector<4x768xf32>
    %59 = tpu.matmul %58, %56, %cst_54 {dimension_numbers = #tpu.dot_dimension_numbers<[1], [0], [0], [1], [0, 0, 1, 1], [], []>} : vector<4x4xbf16>, vector<4x768xbf16>, vector<4x768xf32> -> vector<4x768xf32>
    %c19_i32 = arith.constant 19 : i32
    %60 = tpu.dynamic_rotate %59 by %c19_i32 dim 1 : vector<4x768xf32>, i32 -> vector<4x768xf32>
    %c0_55 = arith.constant 0 : index
    %c1_56 = arith.constant 1 : index
    %c0_57 = arith.constant 0 : index
    %c0_58 = arith.constant 0 : index
    %61 = vector.load %arg5[%c0_55, %c1_56, %c0_57, %c0_58] : memref<3x3x4x4xbf16, #tpu.memory_space<vmem>>, vector<1x1x4x4xbf16>
    %62 = vector.shape_cast %61 : vector<1x1x4x4xbf16> to vector<4x4xbf16>
    %cst_59 = arith.constant dense<0.000000e+00> : vector<4x768xf32>
    %63 = tpu.matmul %62, %56, %cst_59 {dimension_numbers = #tpu.dot_dimension_numbers<[1], [0], [0], [1], [0, 0, 1, 1], [], []>} : vector<4x4xbf16>, vector<4x768xbf16>, vector<4x768xf32> -> vector<4x768xf32>
    %c18_i32 = arith.constant 18 : i32
    %64 = tpu.dynamic_rotate %63 by %c18_i32 dim 1 : vector<4x768xf32>, i32 -> vector<4x768xf32>
    %65 = arith.addf %60, %64 : vector<4x768xf32>
    %c0_60 = arith.constant 0 : index
    %c2_61 = arith.constant 2 : index
    %c0_62 = arith.constant 0 : index
    %c0_63 = arith.constant 0 : index
    %66 = vector.load %arg5[%c0_60, %c2_61, %c0_62, %c0_63] : memref<3x3x4x4xbf16, #tpu.memory_space<vmem>>, vector<1x1x4x4xbf16>
    %67 = vector.shape_cast %66 : vector<1x1x4x4xbf16> to vector<4x4xbf16>
    %cst_64 = arith.constant dense<0.000000e+00> : vector<4x768xf32>
    %68 = tpu.matmul %67, %56, %cst_64 {dimension_numbers = #tpu.dot_dimension_numbers<[1], [0], [0], [1], [0, 0, 1, 1], [], []>} : vector<4x4xbf16>, vector<4x768xbf16>, vector<4x768xf32> -> vector<4x768xf32>
    %c17_i32 = arith.constant 17 : i32
    %69 = tpu.dynamic_rotate %68 by %c17_i32 dim 1 : vector<4x768xf32>, i32 -> vector<4x768xf32>
    %70 = arith.addf %65, %69 : vector<4x768xf32>
    %c1_65 = arith.constant 1 : index
    %c0_66 = arith.constant 0 : index
    %c0_67 = arith.constant 0 : index
    %c0_68 = arith.constant 0 : index
    %71 = vector.load %arg5[%c1_65, %c0_66, %c0_67, %c0_68] : memref<3x3x4x4xbf16, #tpu.memory_space<vmem>>, vector<1x1x4x4xbf16>
    %72 = vector.shape_cast %71 : vector<1x1x4x4xbf16> to vector<4x4xbf16>
    %cst_69 = arith.constant dense<0.000000e+00> : vector<4x768xf32>
    %73 = tpu.matmul %72, %56, %cst_69 {dimension_numbers = #tpu.dot_dimension_numbers<[1], [0], [0], [1], [0, 0, 1, 1], [], []>} : vector<4x4xbf16>, vector<4x768xbf16>, vector<4x768xf32> -> vector<4x768xf32>
    %c1_i32 = arith.constant 1 : i32
    %74 = tpu.dynamic_rotate %73 by %c1_i32 dim 1 : vector<4x768xf32>, i32 -> vector<4x768xf32>
    %75 = arith.addf %70, %74 : vector<4x768xf32>
    %c1_70 = arith.constant 1 : index
    %c1_71 = arith.constant 1 : index
    %c0_72 = arith.constant 0 : index
    %c0_73 = arith.constant 0 : index
    %76 = vector.load %arg5[%c1_70, %c1_71, %c0_72, %c0_73] : memref<3x3x4x4xbf16, #tpu.memory_space<vmem>>, vector<1x1x4x4xbf16>
    %77 = vector.shape_cast %76 : vector<1x1x4x4xbf16> to vector<4x4xbf16>
    %cst_74 = arith.constant dense<0.000000e+00> : vector<4x768xf32>
    %78 = tpu.matmul %77, %56, %cst_74 {dimension_numbers = #tpu.dot_dimension_numbers<[1], [0], [0], [1], [0, 0, 1, 1], [], []>} : vector<4x4xbf16>, vector<4x768xbf16>, vector<4x768xf32> -> vector<4x768xf32>
    %79 = arith.addf %75, %78 : vector<4x768xf32>
    %c1_75 = arith.constant 1 : index
    %c2_76 = arith.constant 2 : index
    %c0_77 = arith.constant 0 : index
    %c0_78 = arith.constant 0 : index
    %80 = vector.load %arg5[%c1_75, %c2_76, %c0_77, %c0_78] : memref<3x3x4x4xbf16, #tpu.memory_space<vmem>>, vector<1x1x4x4xbf16>
    %81 = vector.shape_cast %80 : vector<1x1x4x4xbf16> to vector<4x4xbf16>
    %cst_79 = arith.constant dense<0.000000e+00> : vector<4x768xf32>
    %82 = tpu.matmul %81, %56, %cst_79 {dimension_numbers = #tpu.dot_dimension_numbers<[1], [0], [0], [1], [0, 0, 1, 1], [], []>} : vector<4x4xbf16>, vector<4x768xbf16>, vector<4x768xf32> -> vector<4x768xf32>
    %c767_i32_80 = arith.constant 767 : i32
    %83 = tpu.dynamic_rotate %82 by %c767_i32_80 dim 1 : vector<4x768xf32>, i32 -> vector<4x768xf32>
    %84 = arith.addf %79, %83 : vector<4x768xf32>
    %c2_81 = arith.constant 2 : index
    %c0_82 = arith.constant 0 : index
    %c0_83 = arith.constant 0 : index
    %c0_84 = arith.constant 0 : index
    %85 = vector.load %arg5[%c2_81, %c0_82, %c0_83, %c0_84] : memref<3x3x4x4xbf16, #tpu.memory_space<vmem>>, vector<1x1x4x4xbf16>
    %86 = vector.shape_cast %85 : vector<1x1x4x4xbf16> to vector<4x4xbf16>
    %cst_85 = arith.constant dense<0.000000e+00> : vector<4x768xf32>
    %87 = tpu.matmul %86, %56, %cst_85 {dimension_numbers = #tpu.dot_dimension_numbers<[1], [0], [0], [1], [0, 0, 1, 1], [], []>} : vector<4x4xbf16>, vector<4x768xbf16>, vector<4x768xf32> -> vector<4x768xf32>
    %c751_i32 = arith.constant 751 : i32
    %88 = tpu.dynamic_rotate %87 by %c751_i32 dim 1 : vector<4x768xf32>, i32 -> vector<4x768xf32>
    %89 = arith.addf %84, %88 : vector<4x768xf32>
    %c2_86 = arith.constant 2 : index
    %c1_87 = arith.constant 1 : index
    %c0_88 = arith.constant 0 : index
    %c0_89 = arith.constant 0 : index
    %90 = vector.load %arg5[%c2_86, %c1_87, %c0_88, %c0_89] : memref<3x3x4x4xbf16, #tpu.memory_space<vmem>>, vector<1x1x4x4xbf16>
    %91 = vector.shape_cast %90 : vector<1x1x4x4xbf16> to vector<4x4xbf16>
    %cst_90 = arith.constant dense<0.000000e+00> : vector<4x768xf32>
    %92 = tpu.matmul %91, %56, %cst_90 {dimension_numbers = #tpu.dot_dimension_numbers<[1], [0], [0], [1], [0, 0, 1, 1], [], []>} : vector<4x4xbf16>, vector<4x768xbf16>, vector<4x768xf32> -> vector<4x768xf32>
    %c750_i32_91 = arith.constant 750 : i32
    %93 = tpu.dynamic_rotate %92 by %c750_i32_91 dim 1 : vector<4x768xf32>, i32 -> vector<4x768xf32>
    %94 = arith.addf %89, %93 : vector<4x768xf32>
    %c2_92 = arith.constant 2 : index
    %c2_93 = arith.constant 2 : index
    %c0_94 = arith.constant 0 : index
    %c0_95 = arith.constant 0 : index
    %95 = vector.load %arg5[%c2_92, %c2_93, %c0_94, %c0_95] : memref<3x3x4x4xbf16, #tpu.memory_space<vmem>>, vector<1x1x4x4xbf16>
    %96 = vector.shape_cast %95 : vector<1x1x4x4xbf16> to vector<4x4xbf16>
    %cst_96 = arith.constant dense<0.000000e+00> : vector<4x768xf32>
    %97 = tpu.matmul %96, %56, %cst_96 {dimension_numbers = #tpu.dot_dimension_numbers<[1], [0], [0], [1], [0, 0, 1, 1], [], []>} : vector<4x4xbf16>, vector<4x768xbf16>, vector<4x768xf32> -> vector<4x768xf32>
    %c749_i32_97 = arith.constant 749 : i32
    %98 = tpu.dynamic_rotate %97 by %c749_i32_97 dim 1 : vector<4x768xf32>, i32 -> vector<4x768xf32>
    %99 = arith.addf %94, %98 : vector<4x768xf32>
    %c0_98 = arith.constant 0 : index
    %c0_99 = arith.constant 0 : index
    %100 = vector.load %arg6[%c0_98, %c0_99] : memref<4x1xf32, #tpu.memory_space<vmem>>, vector<4x1xf32>
    %101 = vector.broadcast %100 : vector<4x1xf32> to vector<4x768xf32>
    %102 = arith.mulf %99, %101 : vector<4x768xf32>
    %c0_100 = arith.constant 0 : index
    %c0_101 = arith.constant 0 : index
    %103 = vector.load %arg7[%c0_100, %c0_101] : memref<4x1xf32, #tpu.memory_space<vmem>>, vector<4x1xf32>
    %104 = vector.broadcast %103 : vector<4x1xf32> to vector<4x768xf32>
    %105 = arith.addf %102, %104 : vector<4x768xf32>
    %c749_i32_102 = arith.constant 749 : i32
    %106 = tpu.dynamic_rotate %0 by %c749_i32_102 dim 1 : vector<4x768xf32>, i32 -> vector<4x768xf32>
    %107 = arith.addf %105, %106 : vector<4x768xf32>
    %cst_103 = arith.constant 0.000000e+00 : f32
    %108 = vector.broadcast %cst_103 : f32 to vector<4x768xf32>
    %109 = arith.maximumf %107, %108 : vector<4x768xf32>
    %c0_104 = arith.constant 0 : index
    %c0_105 = arith.constant 0 : index
    %110 = vector.load %arg9[%c0_104, %c0_105] : memref<4x768xf32, #tpu.memory_space<vmem>>, vector<4x768xf32>
    tpu.vector_store %arg9[%c0_104, %c0_105], %109 {strides = array<i32>} : memref<4x768xf32, #tpu.memory_space<vmem>>, vector<4x768xf32>,
    return
  }
  func.func @transform_0(%arg0: i32) -> (i32, i32) {
    %c0_i32 = arith.constant 0 : i32
    %c0_i32_0 = arith.constant 0 : i32
    return %c0_i32, %arg0 : i32, i32
  }
  func.func @transform_1(%arg0: i32) -> (i32, i32, i32, i32) {
    %c0_i32 = arith.constant 0 : i32
    %c0_i32_0 = arith.constant 0 : i32
    %c0_i32_1 = arith.constant 0 : i32
    %c0_i32_2 = arith.constant 0 : i32
    %c0_i32_3 = arith.constant 0 : i32
    return %c0_i32, %c0_i32_0, %c0_i32_1, %c0_i32_2 : i32, i32, i32, i32
  }
  func.func @transform_2(%arg0: i32) -> (i32, i32) {
    %c0_i32 = arith.constant 0 : i32
    %c0_i32_0 = arith.constant 0 : i32
    %c0_i32_1 = arith.constant 0 : i32
    return %c0_i32, %c0_i32_0 : i32, i32
  }
  func.func @transform_3(%arg0: i32) -> (i32, i32) {
    %c0_i32 = arith.constant 0 : i32
    %c0_i32_0 = arith.constant 0 : i32
    %c0_i32_1 = arith.constant 0 : i32
    return %c0_i32, %c0_i32_0 : i32, i32
  }
  func.func @transform_4(%arg0: i32) -> (i32, i32, i32, i32) {
    %c0_i32 = arith.constant 0 : i32
    %c0_i32_0 = arith.constant 0 : i32
    %c0_i32_1 = arith.constant 0 : i32
    %c0_i32_2 = arith.constant 0 : i32
    %c0_i32_3 = arith.constant 0 : i32
    return %c0_i32, %c0_i32_0, %c0_i32_1, %c0_i32_2 : i32, i32, i32, i32
  }
  func.func @transform_5(%arg0: i32) -> (i32, i32) {
    %c0_i32 = arith.constant 0 : i32
    %c0_i32_0 = arith.constant 0 : i32
    %c0_i32_1 = arith.constant 0 : i32
    return %c0_i32, %c0_i32_0 : i32, i32
  }
  func.func @transform_6(%arg0: i32) -> (i32, i32) {
    %c0_i32 = arith.constant 0 : i32
    %c0_i32_0 = arith.constant 0 : i32
    %c0_i32_1 = arith.constant 0 : i32
    return %c0_i32, %c0_i32_0 : i32, i32
  }
  func.func @transform_7(%arg0: i32) -> (i32, i32) {
    %c0_i32 = arith.constant 0 : i32
    %c0_i32_0 = arith.constant 0 : i32
    %c0_i32_1 = arith.constant 0 : i32
    return %c0_i32, %c0_i32_0 : i32, i32
  }
  func.func @transform_8(%arg0: i32) -> (i32, i32) {
    %c0_i32 = arith.constant 0 : i32
    %c0_i32_0 = arith.constant 0 : i32
    return %c0_i32, %arg0 : i32, i32
  }
}

</mosaic_0001>

<bundles_post_ra>
// kernel: tpu_custom_call.1
= control target key start
LH: loop header
LB: loop body
LE: loop exit
PB: predicated region body
PF: predicated region fallthrough
CT: control target
= control target key end

     0   :  { %13 = vsyncpa [#allocation3], 0  ;;  %s4104_s0 = inlined_call_operand.hbm [shape: f32[4,768], index: 0, kind: input, shape index: {}]   ;;  %s4105_s1 = inlined_call_operand.vmem [shape: bf16[3,3,4,4], index: 1, kind: input, shape index: {}]   ;;  %s4106_s2 = inlined_call_operand.vmem [shape: f32[4,1], index: 2, kind: input, shape index: {}]   ;;  %s4107_s3 = inlined_call_operand.vmem [shape: f32[4,1], index: 3, kind: input, shape index: {}]   ;;  %s4108_s4 = inlined_call_operand.hbm [shape: bf16[3,3,4,4], index: 4, kind: input, shape index: {}]   ;;  %s4109_s5 = inlined_call_operand.vmem [shape: f32[4,1], index: 5, kind: input, shape index: {}]   ;;  %s4110_s6 = inlined_call_operand.vmem [shape: f32[4,1], index: 6, kind: input, shape index: {}]   ;;  %s4111_s7 = inlined_call_operand.vmem [shape: f32[1,768], index: 7, kind: input, shape index: {}]   ;;  %s4112_s8 = inlined_call_operand.hbm [shape: f32[4,768], index: 8, kind: output, shape index: {}]  }
   0x1   :  { %14 = vsyncpa [#allocation6], 0 }
   0x2   :  { %15 = vsyncpa [#allocation4], 0  ;;  %s3181_s27 = smov [#allocation2]   ;;  %s3182_s29 = smov [#allocation5]  }
   0x3   :  { %s22_s28 = sshll.u32 %s3181_s27, 4  ;;  %s37_s30 = sshll.u32 %s3182_s29, 4  ;;  %s23_s28 = int_to_ptr.vmem [resolvable:$true] %s22_s28  ;;  %s3245_s30 = int_to_ptr.vmem [resolvable:$true] %s37_s30 }
   0x4   :  { %s3109_s11 = scalar_lea.hbm %s4104_s0, 384 }
   0x5   :  { %p3110_p0 = scmp.ne.s32.totalorder %s4104_s0, %s3109_s11  ;;  %p3113_p1 = scmp.lt.u32.totalorder %s3109_s11, %s4104_s0 }
   0x7   :  { %p3115_p2 = pnand %p3113_p1, %p3110_p0 }
   0x9   :  { %3118 = shalt.err (!%p3115_p2)
}
   0xa   :  { %s3119_s16 = scalar_lea.vmem %s23_s28, 384  ;;  %p3124_p4 = scmp.lt.s32.totalorder %s23_s28, %s23_s28 }
   0xb   :  { %p3120_p3 = scmp.ne.s32.totalorder %s23_s28, %s3119_s16  ;;  %p3125_p5 = scmp.lt.s32.totalorder %s3119_s16, %s3119_s16 }
   0xd   :  { %p3126_p6 = por %p3125_p5, %p3124_p4 }
   0xf   :  { %p3127_p7 = pnand %p3126_p6, %p3120_p3 }
  0x11   :  { %3130 = shalt.err (!%p3127_p7)
}
  0x12   :  { %25 = dma.hbm_to_vmem [thread:$0]  %s4104_s0, 384, %s23_s28, [#allocation3]  }
  0x13   :  { %s3131_s21 = scalar_lea.hbm %s4108_s4, 288 }
  0x14   :  { %p3132_p8 = scmp.ne.s32.totalorder %s4108_s4, %s3131_s21  ;;  %p3135_p9 = scmp.lt.u32.totalorder %s3131_s21, %s4108_s4 }
  0x16   :  { %p3137_p10 = pnand %p3135_p9, %p3132_p8 }
  0x18   :  { %3140 = shalt.err (!%p3137_p10)
}
  0x19   :  { %s3141_s26 = scalar_lea.vmem %s3245_s30, 288  ;;  %p3146_p12 = scmp.lt.s32.totalorder %s3245_s30, %s3245_s30 }
  0x1a   :  { %p3142_p11 = scmp.ne.s32.totalorder %s3245_s30, %s3141_s26  ;;  %p3147_p13 = scmp.lt.s32.totalorder %s3141_s26, %s3141_s26 }
  0x1c   :  { %p3148_p0 = por %p3147_p13, %p3146_p12 }
  0x1e   :  { %p3149_p1 = pnand %p3148_p0, %p3142_p11 }
  0x20   :  { %3152 = shalt.err (!%p3149_p1)
}
  0x21   :  { %s3183_s0 = smov 32   ;;  %s3184_s27 = smov 2  }
  0x22   :  { %43 = dma.hbm_to_vmem [thread:$0]  %s4108_s4, 288, %s3245_s30, [#allocation6], %s3183_s0, %s3183_s0, %s3184_s27  }
  0x23   :  { %3175 = dma.done.wait [#allocation3], 384  }
  0x24   :  { %3176 = vsyncadd [#allocation3], 4294966912 }
  0x25   :  { %3177 = dma.done.wait [#allocation6], 288  }
  0x26   :  { %3178 = vsyncadd [#allocation6], 4294967008  ;;  %v3185_v0 = vmov 0   ;;  %v3280_v1 = vld [vmem:[#allocation2] sm:$0xff]  ;;  %vm82_vm0 = vcmask 1041408   ;;  %v58_v2 = vld [vmem:[#allocation2 + $0x8] sm:$0xff] }
  0x27   :  { %133 = vmatprep.mubr.bf16.mxu0 %v3185_v0  ;;  %174 = vmatprep.mubr.bf16.mxu1 %v3185_v0  ;;  %v3284_v3 = vcombine.high %v3280_v1, %v3280_v1  ;;  %v3286_v4 = vcombine.high %v58_v2, %v58_v2  ;;  %v69_v5 = vpack.c.bf16 %v3280_v1, %v3280_v1  ;;  %v59_v7 = vld [vmem:[#allocation2 + $0x10] sm:$0xff]  ;;  %v1442_v15 = vld [vmem:[%s4106_s2] sm:$0xf]  ;;  %vm78_vm1 = vcmask 31744   ;;  %v2980_v20 = vld [vmem:[%s4105_s1 + $0x4] sm:$0x3] }
  0x28   :  { %3102 = vset.pattern.permute.xlu0 %v3185_v0  ;;  %3103 = vset.pattern.permute.xlu1 %v3185_v0  ;;  %v71_v6 = vpack.c.bf16 %v58_v2, %v58_v2  ;;  %v3290_v8 = vcombine.high %v59_v7, %v59_v7  ;;  %v73_v9 = vpack.c.bf16 %v59_v7, %v59_v7  ;;  %v2967_v16 = vld [vmem:[%s4105_s1 + $0x2] sm:$0x3]  ;;  %v75_v19 = vld [vmem:[%s4105_s1] sm:$0x3]  ;;  %v2987_v21 = vld [vmem:[%s4105_s1 + $0x6] sm:$0x3] }
  0x29   :  { %v3294_v10 = vpack.c.bf16 %v3284_v3, %v3284_v3  ;;  %v3298_v11 = vpack.c.bf16 %v3286_v4, %v3286_v4  ;;  %v3301_v12 = vsel %vm82_vm0, %v69_v5, 0  ;;  %1445 = vperm.xlu0 %3102, %v1442_v15   ;;  %v1454_v18 = vld [vmem:[%s4107_s3] sm:$0xf]  ;;  %v2994_v22 = vld [vmem:[%s4105_s1 + $0x8] sm:$0x3]  ;;  %s3186_s0 = smov 127  }
  0x2a   :  { %v3304_v13 = vsel %vm82_vm0, %v71_v6, 0  ;;  %v3308_v14 = vpack.c.bf16 %v3290_v8, %v3290_v8  ;;  %v3327_v17 = vsel %vm82_vm0, %v73_v9, 0  ;;  %v3001_v23 = vld [vmem:[%s4105_s1 + $0xa] sm:$0x3]  ;;  %v3008_v24 = vld [vmem:[%s4105_s1 + $0xc] sm:$0x3] }
  0x2b   :  { %2968 = vmatprep.subr.msk.bf16.mxu0 %vm82_vm0, %v3294_v10  ;;  %2970 = vmatprep.subr.msk.bf16.mxu1 %vm82_vm0, %v3298_v11  ;;  %v3015_v25 = vld [vmem:[%s4105_s1 + $0xe] sm:$0x3]  ;;  %v3022_v26 = vld [vmem:[%s4105_s1 + $0x10] sm:$0x3]  ;;  %s3187_s1 = smov 126   ;;  %s3188_s27 = smov 110  }
  0x2c   :  { %102 = vmatpush1.bf16.msra.mxu0 %v3301_v12  ;;  %143 = vmatpush1.bf16.msra.mxu1 %v3304_v13  ;;  %s3189_s28 = smov 109   ;;  %s3190_s29 = smov 108  }
  0x2d   :  { %2972 = vmatprep.subr.msk.bf16.mxu0 %vm82_vm0, %v3308_v14  ;;  %2974 = vmatprep.subr.msk.bf16.mxu1 %vm82_vm0, %v3294_v10  ;;  %s3191_s4 = smov 92   ;;  %s3192_s30 = smov 91  }
  0x2e   :  { %1457 = vperm.xlu0 %3102, %v1454_v18   ;;  %s3193_s9 = smov 90   ;;  %s3195_s13 = smov 18  }
  0x2f   :  { %2969 = vmatmul.mubr.msk.bf16.vlgmr.msra.gmra.mrb[0].mxu0 %vm78_vm1, %v2967_v16  ;;  %2971 = vmatmul.mubr.msk.bf16.vlgmr.msra.gmra.mrb[0].mxu1 %vm78_vm1, %v2967_v16  ;;  %s3196_s3 = smov 17   ;;  %s3197_s14 = smov 1  }
  0x30   :  { %184 = vmatpush1.bf16.msra.mxu0 %v3327_v17  ;;  %249 = vmatpush1.bf16.msra.mxu1 %v3301_v12  ;;  %s3198_s15 = smov 111   ;;  %s3199_s16 = smov [#allocation7]  }
  0x31   :  { %215 = vmatprep.mubr.bf16.mxu0 %v3185_v0  ;;  %280 = vmatprep.mubr.bf16.mxu1 %v3185_v0  ;;  %s2957_s17 = sshll.u32 %s3199_s16, 4  ;;  %s2958_s17 = int_to_ptr.vmem [resolvable:$true] %s2957_s17 }
  0x32   :  { %2976 = vmatprep.subr.msk.bf16.mxu0 %vm82_vm0, %v3298_v11  ;;  %2978 = vmatprep.subr.msk.bf16.mxu1 %vm82_vm0, %v3308_v14  ;;  %s3153_s18 = scalar_lea.vmem %s2958_s17, 384  ;;  %p3158_p3 = scmp.lt.s32.totalorder %s2958_s17, %s2958_s17 }
  0x33   :  { %p3154_p2 = scmp.ne.s32.totalorder %s2958_s17, %s3153_s18  ;;  %p3159_p4 = scmp.lt.s32.totalorder %s3153_s18, %s3153_s18 }
  0x35   :  { %p3160_p5 = por %p3159_p4, %p3158_p3 }
  0x37   :  { %2973 = vmatmul.mubr.msk.bf16.vlgmr.msra.gmra.mrb[4].mxu0 %vm78_vm1, %v2967_v16  ;;  %2975 = vmatmul.mubr.msk.bf16.vlgmr.msra.gmra.mrb[4].mxu1 %vm78_vm1, %v75_v19  ;;  %p3161_p6 = pnand %p3160_p5, %p3154_p2 }
  0x38   :  { %290 = vmatpush1.bf16.msra.mxu0 %v3304_v13  ;;  %331 = vmatpush1.bf16.msra.mxu1 %v3327_v17 }
  0x39   :  { %321 = vmatprep.mubr.bf16.mxu0 %v3185_v0  ;;  %362 = vmatprep.mubr.bf16.mxu1 %v3185_v0 }
  0x3a   :  { %2981 = vmatprep.subr.msk.bf16.mxu0 %vm82_vm0, %v3294_v10  ;;  %2983 = vmatprep.subr.msk.bf16.mxu1 %vm82_vm0, %v3298_v11 }
  0x3f   :  { %2977 = vmatmul.mubr.msk.bf16.vlgmr.msra.gmra.mrb[8].mxu0 %vm78_vm1, %v75_v19  ;;  %2979 = vmatmul.mubr.msk.bf16.vlgmr.msra.gmra.mrb[8].mxu1 %vm78_vm1, %v75_v19 }
  0x40   :  { %377 = vmatpush1.bf16.msra.mxu0 %v3301_v12  ;;  %418 = vmatpush1.bf16.msra.mxu1 %v3304_v13 }
  0x41   :  { %408 = vmatprep.mubr.bf16.mxu0 %v3185_v0  ;;  %449 = vmatprep.mubr.bf16.mxu1 %v3185_v0 }
  0x42   :  { %2985 = vmatprep.subr.msk.bf16.mxu0 %vm82_vm0, %v3308_v14  ;;  %2988 = vmatprep.subr.msk.bf16.mxu1 %vm82_vm0, %v3294_v10 }
  0x47   :  { %2982 = vmatmul.mubr.msk.bf16.vlgmr.msra.gmra.mrb[12].mxu0 %vm78_vm1, %v2980_v20  ;;  %2984 = vmatmul.mubr.msk.bf16.vlgmr.msra.gmra.mrb[12].mxu1 %vm78_vm1, %v2980_v20 }
  0x48   :  { %459 = vmatpush1.bf16.msra.mxu0 %v3327_v17  ;;  %530 = vmatpush1.bf16.msra.mxu1 %v3301_v12 }
  0x49   :  { %490 = vmatprep.mubr.bf16.mxu0 %v3185_v0  ;;  %561 = vmatprep.mubr.bf16.mxu1 %v3185_v0 }
  0x4a   :  { %2990 = vmatprep.subr.msk.bf16.mxu0 %vm82_vm0, %v3298_v11  ;;  %2992 = vmatprep.subr.msk.bf16.mxu1 %vm82_vm0, %v3308_v14 }
  0x4f   :  { %2986 = vmatmul.mubr.msk.bf16.vlgmr.msra.gmra.mrb[16].mxu0 %vm78_vm1, %v2980_v20  ;;  %2989 = vmatmul.mubr.msk.bf16.vlgmr.msra.gmra.mrb[16].mxu1 %vm78_vm1, %v2987_v21 }
  0x50   :  { %571 = vmatpush1.bf16.msra.mxu0 %v3304_v13  ;;  %612 = vmatpush1.bf16.msra.mxu1 %v3327_v17 }
  0x51   :  { %602 = vmatprep.mubr.bf16.mxu0 %v3185_v0  ;;  %643 = vmatprep.mubr.bf16.mxu1 %v3185_v0 }
  0x52   :  { %2995 = vmatprep.subr.msk.bf16.mxu0 %vm82_vm0, %v3294_v10  ;;  %2997 = vmatprep.subr.msk.bf16.mxu1 %vm82_vm0, %v3298_v11 }
  0x57   :  { %2991 = vmatmul.mubr.msk.bf16.vlgmr.msra.gmra.mrb[20].mxu0 %vm78_vm1, %v2987_v21  ;;  %2993 = vmatmul.mubr.msk.bf16.vlgmr.msra.gmra.mrb[20].mxu1 %vm78_vm1, %v2987_v21 }
  0x58   :  { %683 = vmatpush1.bf16.msra.mxu0 %v3301_v12  ;;  %724 = vmatpush1.bf16.msra.mxu1 %v3304_v13 }
  0x59   :  { %714 = vmatprep.mubr.bf16.mxu0 %v3185_v0  ;;  %755 = vmatprep.mubr.bf16.mxu1 %v3185_v0 }
  0x5a   :  { %2999 = vmatprep.subr.msk.bf16.mxu0 %vm82_vm0, %v3308_v14  ;;  %3002 = vmatprep.subr.msk.bf16.mxu1 %vm82_vm0, %v3294_v10 }
  0x5f   :  { %2996 = vmatmul.mubr.msk.bf16.vlgmr.msra.gmra.mrb[24].mxu0 %vm78_vm1, %v2994_v22  ;;  %2998 = vmatmul.mubr.msk.bf16.vlgmr.msra.gmra.mrb[24].mxu1 %vm78_vm1, %v2994_v22 }
  0x60   :  { %765 = vmatpush1.bf16.msra.mxu0 %v3327_v17  ;;  %836 = vmatpush1.bf16.msra.mxu1 %v3301_v12 }
  0x61   :  { %796 = vmatprep.mubr.bf16.mxu0 %v3185_v0  ;;  %867 = vmatprep.mubr.bf16.mxu1 %v3185_v0 }
  0x62   :  { %3004 = vmatprep.subr.msk.bf16.mxu0 %vm82_vm0, %v3298_v11  ;;  %3006 = vmatprep.subr.msk.bf16.mxu1 %vm82_vm0, %v3308_v14 }
  0x67   :  { %3000 = vmatmul.mubr.msk.bf16.vlgmr.msra.gmra.mrb[28].mxu0 %vm78_vm1, %v2994_v22  ;;  %3003 = vmatmul.mubr.msk.bf16.vlgmr.msra.gmra.mrb[28].mxu1 %vm78_vm1, %v3001_v23 }
  0x68   :  { %877 = vmatpush1.bf16.msra.mxu0 %v3304_v13  ;;  %918 = vmatpush1.bf16.msra.mxu1 %v3327_v17 }
  0x69   :  { %908 = vmatprep.mubr.bf16.mxu0 %v3185_v0  ;;  %949 = vmatprep.mubr.bf16.mxu1 %v3185_v0 }
  0x6a   :  { %3009 = vmatprep.subr.msk.bf16.mxu0 %vm82_vm0, %v3294_v10  ;;  %3011 = vmatprep.subr.msk.bf16.mxu1 %vm82_vm0, %v3298_v11 }
  0x6f   :  { %3005 = vmatmul.mubr.msk.bf16.vlgmr.msra.gmra.mrb[32].mxu0 %vm78_vm1, %v3001_v23  ;;  %3007 = vmatmul.mubr.msk.bf16.vlgmr.msra.gmra.mrb[32].mxu1 %vm78_vm1, %v3001_v23 }
  0x70   :  { %989 = vmatpush1.bf16.msra.mxu0 %v3301_v12  ;;  %1030 = vmatpush1.bf16.msra.mxu1 %v3304_v13 }
  0x71   :  { %1020 = vmatprep.mubr.bf16.mxu0 %v3185_v0  ;;  %1061 = vmatprep.mubr.bf16.mxu1 %v3185_v0 }
  0x72   :  { %3013 = vmatprep.subr.msk.bf16.mxu0 %vm82_vm0, %v3308_v14  ;;  %3016 = vmatprep.subr.msk.bf16.mxu1 %vm82_vm0, %v3294_v10 }
  0x77   :  { %3010 = vmatmul.mubr.msk.bf16.vlgmr.msra.gmra.mrb[36].mxu0 %vm78_vm1, %v3008_v24  ;;  %3012 = vmatmul.mubr.msk.bf16.vlgmr.msra.gmra.mrb[36].mxu1 %vm78_vm1, %v3008_v24 }
  0x78   :  { %1071 = vmatpush1.bf16.msra.mxu0 %v3327_v17  ;;  %1142 = vmatpush1.bf16.msra.mxu1 %v3301_v12 }
  0x79   :  { %1102 = vmatprep.mubr.bf16.mxu0 %v3185_v0  ;;  %1173 = vmatprep.mubr.bf16.mxu1 %v3185_v0 }
  0x7a   :  { %3018 = vmatprep.subr.msk.bf16.mxu0 %vm82_vm0, %v3298_v11  ;;  %3020 = vmatprep.subr.msk.bf16.mxu1 %vm82_vm0, %v3308_v14 }
  0x7f   :  { %3014 = vmatmul.mubr.msk.bf16.vlgmr.msra.gmra.mrb[40].mxu0 %vm78_vm1, %v3008_v24  ;;  %3017 = vmatmul.mubr.msk.bf16.vlgmr.msra.gmra.mrb[40].mxu1 %vm78_vm1, %v3015_v25 }
  0x80   :  { %1183 = vmatpush1.bf16.msra.mxu0 %v3304_v13  ;;  %1214 = vmatprep.mubr.bf16.mxu0 %v3185_v0 }
  0x81   :  { %1224 = vmatpush1.bf16.msra.mxu1 %v3327_v17  ;;  %1255 = vmatprep.mubr.bf16.mxu1 %v3185_v0 }
  0x82   :  { %3023 = vmatprep.subr.msk.bf16.mxu0 %vm82_vm0, %v3294_v10  ;;  %3025 = vmatprep.subr.msk.bf16.mxu1 %vm82_vm0, %v3298_v11 }
  0x87   :  { %3019 = vmatmul.mubr.msk.bf16.vlgmr.msra.gmra.mrb[44].mxu0 %vm78_vm1, %v3015_v25  ;;  %3021 = vmatmul.mubr.msk.bf16.vlgmr.msra.gmra.mrb[44].mxu1 %vm78_vm1, %v3015_v25 }
  0x88   :  { %1295 = vmatpush1.bf16.msra.mxu0 %v3301_v12  ;;  %1326 = vmatprep.mubr.bf16.mxu0 %v3185_v0 }
  0x89   :  { %1336 = vmatpush1.bf16.msra.mxu1 %v3304_v13  ;;  %1367 = vmatprep.mubr.bf16.mxu1 %v3185_v0 }
  0x8a   :  { %3027 = vmatprep.subr.msk.bf16.mxu0 %vm82_vm0, %v3308_v14 }
  0x8f   :  { %3024 = vmatmul.mubr.msk.bf16.vlgmr.msra.gmra.mrb[48].mxu0 %vm78_vm1, %v3022_v26  ;;  %3026 = vmatmul.mubr.msk.bf16.vlgmr.msra.gmra.mrb[48].mxu1 %vm78_vm1, %v3022_v26 }
  0x90   :  { %1377 = vmatpush1.bf16.msra.mxu0 %v3327_v17  ;;  %1408 = vmatprep.mubr.bf16.mxu0 %v3185_v0 }
  0x91   :  { %1570 = vmatprep.mubr.bf16.mxu1 %v3185_v0 }
  0x97   :  { %3028 = vmatmul.mubr.msk.bf16.vlgmr.msra.gmra.mrb[52].mxu0 %vm78_vm1, %v3022_v26 }
  0x98   :  { %1611 = vmatprep.mubr.bf16.mxu0 %v3185_v0 }
 0x102   :  { %v135_v27 = vpop.f32.mrb[0].mxu0  ;;  %v176_v28 = vpop.f32.mrb[0].mxu1 }
 0x103   :  { %228 = vrot.lane.b32.xlu1 %v176_v28, %s3186_s0  ;;  %v178_v29 = vpop.f32.mrb[1].mxu1  ;;  %224 = vrot.lane.b32.xlu0 %v135_v27, %s3186_s0  ;;  %v137_v30 = vpop.f32.mrb[1].mxu0 }
 0x104   :  { %v139_v31 = vpop.f32.mrb[2].mxu0  ;;  %v180_v32 = vpop.f32.mrb[2].mxu1 }
 0x105   :  { %v140_v33 = vpop.f32.mrb[3].mxu0  ;;  %v181_v34 = vpop.f32.mrb[3].mxu1 }
 0x107   :  { %226 = vrot.lane.b32.xlu0 %v137_v30, %s3186_s0 }
 0x10a   :  { %v217_v35 = vpop.f32.mrb[4].mxu0  ;;  %v3484_v36 = vpop.f32.mrb[4].mxu1 }
 0x10b   :  { %v3486_v37 = vpop.f32.mrb[5].mxu1  ;;  %230 = vrot.lane.b32.xlu0 %v178_v29, %s3186_s0  ;;  %232 = vrot.lane.b32.xlu1 %v217_v35, %s3186_s0  ;;  %v219_v38 = vpop.f32.mrb[5].mxu0 }
 0x10c   :  { %v221_v39 = vpop.f32.mrb[6].mxu0  ;;  %v286_v40 = vpop.f32.mrb[6].mxu1 }
 0x10d   :  { %v222_v41 = vpop.f32.mrb[7].mxu0  ;;  %v287_v42 = vpop.f32.mrb[7].mxu1 }
 0x10f   :  { %234 = vrot.lane.b32.xlu0 %v219_v38, %s3186_s0 }
 0x112   :  { %v3491_v43 = vpop.f32.mrb[8].mxu0  ;;  %v3493_v44 = vpop.f32.mrb[8].mxu1 }
 0x113   :  { %v3495_v45 = vpop.f32.mrb[9].mxu0  ;;  %v3497_v46 = vpop.f32.mrb[9].mxu1 }
 0x114   :  { %v327_v47 = vpop.f32.mrb[10].mxu0  ;;  %v368_v48 = vpop.f32.mrb[10].mxu1 }
 0x115   :  { %v328_v49 = vpop.f32.mrb[11].mxu0  ;;  %v369_v50 = vpop.f32.mrb[11].mxu1 }
 0x11a   :  { %v410_v51 = vpop.f32.mrb[12].mxu0  ;;  %v451_v52 = vpop.f32.mrb[12].mxu1 }
 0x11b   :  { %v453_v53 = vpop.f32.mrb[13].mxu1  ;;  %499 = vrot.lane.b32.xlu1 %v410_v51, %s3187_s1  ;;  %v412_v54 = vpop.f32.mrb[13].mxu0 }
 0x11c   :  { %v455_v55 = vpop.f32.mrb[14].mxu1  ;;  %501 = vrot.lane.b32.xlu0 %v412_v54, %s3187_s1  ;;  %v414_v56 = vpop.f32.mrb[14].mxu0 }
 0x11d   :  { %v415_v57 = vpop.f32.mrb[15].mxu0  ;;  %v456_v58 = vpop.f32.mrb[15].mxu1 }
 0x11f   :  { %503 = vrot.lane.b32.xlu1 %v451_v52, %s3187_s1 }
 0x120   :  { %505 = vrot.lane.b32.xlu0 %v453_v53, %s3187_s1 }
 0x122   :  { %v492_v59 = vpop.f32.mrb[16].mxu0  ;;  %v563_v60 = vpop.f32.mrb[16].mxu1 }
 0x123   :  { %v565_v61 = vpop.f32.mrb[17].mxu1  ;;  %507 = vrot.lane.b32.xlu1 %v492_v59, %s3187_s1  ;;  %v494_v62 = vpop.f32.mrb[17].mxu0 }
 0x124   :  { %v567_v63 = vpop.f32.mrb[18].mxu1  ;;  %652 = vrot.lane.b32.xlu0 %v563_v60, %s3188_s27  ;;  %v496_v2 = vpop.f32.mrb[18].mxu0 }
 0x125   :  { %v497_v5 = vpop.f32.mrb[19].mxu0  ;;  %v568_v6 = vpop.f32.mrb[19].mxu1 }
 0x127   :  { %654 = vrot.lane.b32.xlu1 %v565_v61, %s3188_s27 }
 0x128   :  { %509 = vrot.lane.b32.xlu0 %v494_v62, %s3187_s1 }
 0x12a   :  { %v604_v7 = vpop.f32.mrb[20].mxu0  ;;  %v645_v9 = vpop.f32.mrb[20].mxu1 }
 0x12b   :  { %v647_v10 = vpop.f32.mrb[21].mxu1  ;;  %660 = vrot.lane.b32.xlu1 %v645_v9, %s3188_s27  ;;  %v606_v11 = vpop.f32.mrb[21].mxu0 }
 0x12c   :  { %v649_v12 = vpop.f32.mrb[22].mxu1  ;;  %656 = vrot.lane.b32.xlu0 %v604_v7, %s3188_s27  ;;  %v608_v13 = vpop.f32.mrb[22].mxu0 }
 0x12d   :  { %v609_v14 = vpop.f32.mrb[23].mxu0  ;;  %v650_v15 = vpop.f32.mrb[23].mxu1 }
 0x12f   :  { %658 = vrot.lane.b32.xlu1 %v606_v11, %s3188_s27 }
 0x130   :  { %662 = vrot.lane.b32.xlu0 %v647_v10, %s3188_s27 }
 0x132   :  { %v716_v16 = vpop.f32.mrb[24].mxu0  ;;  %v757_v17 = vpop.f32.mrb[24].mxu1 }
 0x133   :  { %805 = vrot.lane.b32.xlu1 %v716_v16, %s3189_s28  ;;  %v718_v18 = vpop.f32.mrb[25].mxu0  ;;  %v759_v19 = vpop.f32.mrb[25].mxu1 }
 0x134   :  { %807 = vrot.lane.b32.xlu0 %v718_v18, %s3189_s28  ;;  %v720_v20 = vpop.f32.mrb[26].mxu0  ;;  %v761_v21 = vpop.f32.mrb[26].mxu1 }
 0x135   :  { %v721_v22 = vpop.f32.mrb[27].mxu0  ;;  %v762_v23 = vpop.f32.mrb[27].mxu1 }
 0x137   :  { %809 = vrot.lane.b32.xlu1 %v757_v17, %s3189_s28 }
 0x13a   :  { %v798_v24 = vpop.f32.mrb[28].mxu0  ;;  %v869_v25 = vpop.f32.mrb[28].mxu1 }
 0x13b   :  { %811 = vrot.lane.b32.xlu1 %v759_v19, %s3189_s28  ;;  %813 = vrot.lane.b32.xlu0 %v798_v24, %s3189_s28  ;;  %v800_v26 = vpop.f32.mrb[29].mxu0  ;;  %v871_v27 = vpop.f32.mrb[29].mxu1 }
 0x13c   :  { %v802_v28 = vpop.f32.mrb[30].mxu0  ;;  %v873_v29 = vpop.f32.mrb[30].mxu1 }
 0x13d   :  { %v803_v30 = vpop.f32.mrb[31].mxu0  ;;  %v874_v31 = vpop.f32.mrb[31].mxu1 }
 0x13e   :  { %v3522_v19 = vpop.permute.xlu0 %1445 }
 0x13f   :  { %958 = vrot.lane.b32.xlu1 %v869_v25, %s3190_s29  ;;  %960 = vrot.lane.b32.xlu0 %v871_v27, %s3190_s29  ;;  %v2894_v25 = vld [vmem:[%s4110_s6] sm:$0xf]  ;;  %v236_v27 = vlaneseq }
 0x141   :  { %v3534_v29 = vand.u32 127, %v236_v27 }
 0x142   :  { %v910_v32 = vpop.f32.mrb[32].mxu0  ;;  %v951_v33 = vpop.f32.mrb[32].mxu1 }
 0x143   :  { %815 = vrot.lane.b32.xlu1 %v800_v26, %s3189_s28  ;;  %v912_v34 = vpop.f32.mrb[33].mxu0  ;;  %v953_v35 = vpop.f32.mrb[33].mxu1  ;;  %966 = vrot.lane.b32.xlu0 %v951_v33, %s3190_s29  ;;  %vm238_vm2 = vcmp.lt.s32.totalorder %v3534_v29, 127  ;;  %vm511_vm3 = vcmp.lt.s32.totalorder %v3534_v29, 126  ;;  %vm664_vm4 = vcmp.lt.s32.totalorder %v3534_v29, 110  ;;  %vm817_vm5 = vcmp.lt.s32.totalorder %v3534_v29, 109 }
 0x144   :  { %v914_v38 = vpop.f32.mrb[34].mxu0  ;;  %v955_v39 = vpop.f32.mrb[34].mxu1  ;;  %vm970_vm6 = vcmp.lt.s32.totalorder %v3534_v29, 108  ;;  %vm1123_vm7 = vcmp.lt.s32.totalorder %v3534_v29, 92  ;;  %vm1276_vm8 = vcmp.lt.s32.totalorder %v3534_v29, 91  ;;  %vm1429_vm9 = vcmp.lt.s32.totalorder %v3534_v29, 90 }
 0x145   :  { %v915_v40 = vpop.f32.mrb[35].mxu0  ;;  %v956_v41 = vpop.f32.mrb[35].mxu1  ;;  %vm1673_vm10 = vcmp.lt.s32.totalorder %v3534_v29, 19  ;;  %vm1820_vm11 = vcmp.lt.s32.totalorder %v3534_v29, 18  ;;  %vm1973_vm12 = vcmp.lt.s32.totalorder %v3534_v29, 17  ;;  %vm2126_vm13 = vcmp.lt.s32.totalorder %v3534_v29, 1 }
 0x146   :  { %v3525_v24 = vpop.permute.xlu0 %1457  ;;  %vm2565_vm14 = vcmp.lt.s32.totalorder %v3534_v29, 111 }
 0x147   :  { %962 = vrot.lane.b32.xlu1 %v910_v32, %s3190_s29 }
 0x14a   :  { %v1022_v42 = vpop.f32.mrb[36].mxu0  ;;  %v1063_v47 = vpop.f32.mrb[36].mxu1 }
 0x14b   :  { %964 = vrot.lane.b32.xlu1 %v912_v34, %s3190_s29  ;;  %v1024_v48 = vpop.f32.mrb[37].mxu0  ;;  %v1065_v49 = vpop.f32.mrb[37].mxu1 }
 0x14c   :  { %1113 = vrot.lane.b32.xlu0 %v1024_v48, %s3191_s4  ;;  %v1067_v50 = vpop.f32.mrb[38].mxu1  ;;  %v1026_v51 = vpop.f32.mrb[38].mxu0 }
 0x14d   :  { %v1027_v52 = vpop.f32.mrb[39].mxu0  ;;  %v1068_v53 = vpop.f32.mrb[39].mxu1 }
 0x14f   :  { %968 = vrot.lane.b32.xlu1 %v953_v35, %s3190_s29 }
 0x150   :  { %1117 = vrot.lane.b32.xlu0 %v1065_v49, %s3191_s4 }
 0x152   :  { %v1175_v54 = vpop.f32.mrb[40].mxu1  ;;  %v1104_v55 = vpop.f32.mrb[40].mxu0 }
 0x153   :  { %v1177_v56 = vpop.f32.mrb[41].mxu1  ;;  %1111 = vrot.lane.b32.xlu1 %v1022_v42, %s3191_s4  ;;  %v1106_v57 = vpop.f32.mrb[41].mxu0 }
 0x154   :  { %1266 = vrot.lane.b32.xlu0 %v1177_v56, %s3192_s30  ;;  %v1108_v58 = vpop.f32.mrb[42].mxu0  ;;  %v1179_v59 = vpop.f32.mrb[42].mxu1 }
 0x155   :  { %v1109_v60 = vpop.f32.mrb[43].mxu0  ;;  %v1180_v61 = vpop.f32.mrb[43].mxu1 }
 0x157   :  { %1115 = vrot.lane.b32.xlu1 %v1063_v47, %s3191_s4 }
 0x158   :  { %1121 = vrot.lane.b32.xlu0 %v1106_v57, %s3191_s4 }
 0x15a   :  { %v1216_v62 = vpop.f32.mrb[44].mxu0  ;;  %v1257_v63 = vpop.f32.mrb[44].mxu1 }
 0x15b   :  { %1264 = vrot.lane.b32.xlu1 %v1175_v54, %s3192_s30  ;;  %v1218_v2 = vpop.f32.mrb[45].mxu0  ;;  %v1259_v5 = vpop.f32.mrb[45].mxu1 }
 0x15c   :  { %1272 = vrot.lane.b32.xlu0 %v1257_v63, %s3192_s30  ;;  %v1220_v6 = vpop.f32.mrb[46].mxu0  ;;  %v1261_v7 = vpop.f32.mrb[46].mxu1 }
 0x15d   :  { %v1221_v9 = vpop.f32.mrb[47].mxu0  ;;  %v1262_v10 = vpop.f32.mrb[47].mxu1 }
 0x15f   :  { %1119 = vrot.lane.b32.xlu1 %v1104_v55, %s3191_s4 }
 0x162   :  { %v1328_v11 = vpop.f32.mrb[48].mxu0  ;;  %v1369_v12 = vpop.f32.mrb[48].mxu1 }
 0x163   :  { %1268 = vrot.lane.b32.xlu1 %v1216_v62, %s3192_s30  ;;  %1417 = vrot.lane.b32.xlu0 %v1328_v11, %s3193_s9  ;;  %v1330_v13 = vpop.f32.mrb[49].mxu0  ;;  %v1371_v14 = vpop.f32.mrb[49].mxu1 }
 0x164   :  { %v1332_v15 = vpop.f32.mrb[50].mxu0  ;;  %v1373_v16 = vpop.f32.mrb[50].mxu1 }
 0x165   :  { %v1333_v17 = vpop.f32.mrb[51].mxu0  ;;  %v1374_v18 = vpop.f32.mrb[51].mxu1  ;;  %v3585_v15 = vshrl.u32 %v236_v27, 7 }
 0x167   :  { %1270 = vrot.lane.b32.xlu1 %v1218_v2, %s3192_s30  ;;  %1421 = vrot.lane.b32.xlu0 %v1369_v12, %s3193_s9  ;;  %v1484_v18 = vsub.s32 2, %v3585_v15 }
 0x16a   :  { %v1410_v20 = vpop.f32.mrb[52].mxu0 }
 0x16b   :  { %1423 = vrot.lane.b32.xlu0 %v1371_v14, %s3193_s9  ;;  %1419 = vrot.lane.b32.xlu1 %v1330_v13, %s3193_s9  ;;  %v1412_v21 = vpop.f32.mrb[53].mxu0 }
 0x16c   :  { %v1414_v22 = vpop.f32.mrb[54].mxu0 }
 0x16d   :  { %v1415_v23 = vpop.f32.mrb[55].mxu0 }
 0x16e   :  { %v1476_v23 = vsub.s32 0, %v3585_v15 }
 0x16f   :  { %1274 = vrot.lane.b32.xlu1 %v1259_v5, %s3192_s30  ;;  %1427 = vrot.lane.b32.xlu0 %v1412_v21, %s3193_s9  ;;  %v3596_v21 = vld [vmem:[%s4111_s7] sm:$0x3f] }
 0x173   :  { %1425 = vrot.lane.b32.xlu1 %v1410_v20, %s3193_s9  ;;  %2897 = vperm.xlu0 %3102, %v2894_v25  }
 0x175   :  { %v3530_v26 = vpop.permute.xlu0 %224  ;;  %v229_v28 = vpop.permute.xlu1 %228 }
 0x177   :  { %2908 = vrot.lane.b32.xlu0 %v3284_v3, %s3189_s28 }
 0x179   :  { %v227_v30 = vpop.permute.xlu0 %226 }
 0x17a   :  { %v243_v20 = vsel %vm238_vm2, %v3530_v26, %v227_v30  ;;  %v242_v25 = vsel %vm238_vm2, %v227_v30, %v229_v28 }
 0x17d   :  { %v231_v31 = vpop.permute.xlu0 %230  ;;  %v233_v32 = vpop.permute.xlu1 %232 }
 0x17e   :  { %v241_v33 = vsel %vm238_vm2, %v229_v28, %v231_v31  ;;  %v240_v34 = vsel %vm238_vm2, %v231_v31, %v233_v32  ;;  %v283_v31 = vadd.f32 %v3484_v36, %v243_v20 }
 0x17f   :  { %v3542_v35 = vadd.f32 %v3491_v43, %v241_v33  ;;  %v326_v38 = vadd.f32 %v3495_v45, %v240_v34  ;;  %v3617_v34 = vrot.slane %v3596_v21, %v1484_v18 }
 0x181   :  { %v235_v3 = vpop.permute.xlu0 %234 }
 0x182   :  { %v239_v39 = vsel %vm238_vm2, %v233_v32, %v235_v3  ;;  %v244_v32 = vsel %vm238_vm2, %v235_v3, %v3530_v26  ;;  %v285_v26 = vadd.f32 %v3486_v37, %v242_v25 }
 0x183   :  { %v365_v40 = vadd.f32 %v3493_v44, %v239_v39 }
 0x18d   :  { %v500_v41 = vpop.permute.xlu1 %499 }
 0x18e   :  { %v502_v42 = vpop.permute.xlu0 %501 }
 0x18f   :  { %v516_v27 = vsel %vm511_vm3, %v500_v41, %v502_v42 }
 0x190   :  { %v518_v3 = vadd.f32 %v516_v27, %v283_v31 }
 0x191   :  { %v504_v47 = vpop.permute.xlu1 %503 }
 0x192   :  { %v506_v48 = vpop.permute.xlu0 %505  ;;  %v515_v28 = vsel %vm511_vm3, %v502_v42, %v504_v47  ;;  %v367_v42 = vadd.f32 %v3497_v46, %v244_v32 }
 0x193   :  { %v514_v30 = vsel %vm511_vm3, %v504_v47, %v506_v48 }
 0x195   :  { %v508_v49 = vpop.permute.xlu1 %507 }
 0x196   :  { %v513_v50 = vsel %vm511_vm3, %v506_v48, %v508_v49  ;;  %v3551_v43 = vpop.permute.xlu0 %652 }
 0x197   :  { %v3553_v51 = vadd.f32 %v513_v50, %v326_v38  ;;  %v1480_v38 = vsub.s32 1, %v3585_v15  ;;  %v519_v50 = vadd.f32 %v515_v28, %v285_v26 }
 0x199   :  { %v655_v45 = vpop.permute.xlu1 %654 }
 0x19a   :  { %v510_v52 = vpop.permute.xlu0 %509  ;;  %v669_v36 = vsel %vm664_vm4, %v3551_v43, %v655_v45 }
 0x19b   :  { %v512_v53 = vsel %vm511_vm3, %v508_v49, %v510_v52  ;;  %v517_v39 = vsel %vm511_vm3, %v510_v52, %v500_v41  ;;  %v3633_v49 = vrot.slane %v3596_v21, %v1476_v23  ;;  %v671_v41 = vadd.f32 %v669_v36, %v518_v3 }
 0x19c   :  { %v3557_v44 = vadd.f32 %v512_v53, %v365_v40  ;;  %v520_v53 = vadd.f32 %v514_v30, %v3542_v35  ;;  %v523_v46 = vadd.f32 %v517_v39, %v367_v42 }
 0x19d   :  { %v661_v54 = vpop.permute.xlu1 %660 }
 0x19e   :  { %v657_v55 = vpop.permute.xlu0 %656 }
 0x19f   :  { %v668_v47 = vsel %vm664_vm4, %v655_v45, %v657_v55 }
 0x1a0   :  { %v672_v35 = vadd.f32 %v668_v47, %v519_v50 }
 0x1a1   :  { %v659_v56 = vpop.permute.xlu1 %658 }
 0x1a2   :  { %v3559_v57 = vpop.permute.xlu0 %662  ;;  %v666_v48 = vsel %vm664_vm4, %v659_v56, %v661_v54  ;;  %v667_v37 = vsel %vm664_vm4, %v657_v55, %v659_v56 }
 0x1a3   :  { %v665_v45 = vsel %vm664_vm4, %v661_v54, %v3559_v57  ;;  %v673_v56 = vadd.f32 %v667_v37, %v520_v53  ;;  %v674_v20 = vadd.f32 %v666_v48, %v3553_v51  ;;  %v670_v54 = vsel %vm664_vm4, %v3559_v57, %v3551_v43 }
 0x1a4   :  { %v675_v31 = vadd.f32 %v665_v45, %v3557_v44 }
 0x1a5   :  { %v3561_v58 = vpop.permute.xlu1 %805 }
 0x1a6   :  { %v808_v60 = vpop.permute.xlu0 %807 }
 0x1a7   :  { %v822_v52 = vsel %vm817_vm5, %v3561_v58, %v808_v60 }
 0x1a9   :  { %v810_v59 = vpop.permute.xlu1 %809 }
 0x1aa   :  { %v821_v18 = vsel %vm817_vm5, %v808_v60, %v810_v59  ;;  %v824_v60 = vadd.f32 %v822_v52, %v671_v41 }
 0x1ab   :  { %v825_v32 = vadd.f32 %v821_v18, %v672_v35 }
 0x1ad   :  { %v3563_v61 = vpop.permute.xlu1 %811  ;;  %v3565_v62 = vpop.permute.xlu0 %813 }
 0x1ae   :  { %v820_v55 = vsel %vm817_vm5, %v810_v59, %v3563_v61  ;;  %v819_v30 = vsel %vm817_vm5, %v3563_v61, %v3565_v62 }
 0x1af   :  { %v826_v28 = vadd.f32 %v820_v55, %v673_v56  ;;  %v827_v48 = vadd.f32 %v819_v30, %v674_v20 }
 0x1b1   :  { %v3567_v63 = vpop.permute.xlu1 %958  ;;  %v961_v2 = vpop.permute.xlu0 %960 }
 0x1b2   :  { %v975_v23 = vsel %vm970_vm6, %v3567_v63, %v961_v2 }
 0x1b3   :  { %v977_v36 = vadd.f32 %v975_v23, %v824_v60  ;;  %v1481_v60 = vrot.slane %v3596_v21, %v1480_v38 }
 0x1b5   :  { %v3569_v5 = vpop.permute.xlu1 %815  ;;  %v3571_v6 = vpop.permute.xlu0 %966 }
 0x1b6   :  { %v818_v61 = vsel %vm817_vm5, %v3565_v62, %v3569_v5 }
 0x1b7   :  { %v828_v50 = vadd.f32 %v818_v61, %v675_v31 }
 0x1b9   :  { %v963_v7 = vpop.permute.xlu1 %962 }
 0x1ba   :  { %v974_v59 = vsel %vm970_vm6, %v961_v2, %v963_v7  ;;  %v2882_v2 = vld [vmem:[%s4109_s5] sm:$0xf]  ;;  %s3194_s5 = smov 19  }
 0x1bb   :  { %v978_v26 = vadd.f32 %v974_v59, %v825_v32  ;;  %2885 = vperm.xlu1 %3103, %v2882_v2  }
 0x1bd   :  { %v3573_v9 = vpop.permute.xlu1 %964 }
 0x1be   :  { %v3575_v10 = vpop.permute.xlu0 %1113  ;;  %v973_v51 = vsel %vm970_vm6, %v963_v7, %v3573_v9  ;;  %v823_v7 = vsel %vm817_vm5, %v3569_v5, %v3561_v58  ;;  %v972_v41 = vsel %vm970_vm6, %v3573_v9, %v3571_v6 }
 0x1bf   :  { %v979_v3 = vadd.f32 %v973_v51, %v826_v28  ;;  %2906 = vrot.lane.b32.xlu1 %v3280_v1, %s3189_s28 }
 0x1c1   :  { %v3577_v11 = vpop.permute.xlu1 %968 }
 0x1c2   :  { %v3579_v12 = vpop.permute.xlu0 %1117  ;;  %v971_v52 = vsel %vm970_vm6, %v3571_v6, %v3577_v11 }
 0x1c5   :  { %v3581_v13 = vpop.permute.xlu1 %1111 }
 0x1c6   :  { %v3583_v14 = vpop.permute.xlu0 %1266  ;;  %v1128_v43 = vsel %vm1123_vm7, %v3581_v13, %v3575_v10 }
 0x1c7   :  { %v1130_v58 = vadd.f32 %v1128_v43, %v977_v36 }
 0x1c9   :  { %v1116_v16 = vpop.permute.xlu1 %1115 }
 0x1ca   :  { %v3587_v17 = vpop.permute.xlu0 %1121  ;;  %v1126_v57 = vsel %vm1123_vm7, %v1116_v16, %v3579_v12  ;;  %v1127_v44 = vsel %vm1123_vm7, %v3575_v10, %v1116_v16  ;;  %v676_v10 = vadd.f32 %v670_v54, %v523_v46 }
 0x1cb   :  { %v1131_v5 = vadd.f32 %v1127_v44, %v978_v26  ;;  %v1132_v37 = vadd.f32 %v1126_v57, %v979_v3  ;;  %v1129_v9 = vsel %vm1123_vm7, %v3587_v17, %v3581_v13  ;;  %v981_v13 = vadd.f32 %v971_v52, %v828_v50 }
 0x1cc   :  { %v829_v53 = vadd.f32 %v823_v7, %v676_v10  ;;  %v1496_v7 = vsub.s32 5, %v3585_v15  ;;  %v1488_v26 = vsub.s32 3, %v3585_v15 }
 0x1cd   :  { %v3600_v22 = vpop.permute.xlu1 %1264 }
 0x1ce   :  { %v3614_v33 = vpop.permute.xlu0 %1272  ;;  %v1281_v16 = vsel %vm1276_vm8, %v3600_v22, %v3583_v14 }
 0x1cf   :  { %v1283_v46 = vadd.f32 %v1281_v16, %v1130_v58 }
 0x1d1   :  { %v3630_v40 = vpop.permute.xlu1 %1119 }
 0x1d2   :  { %v1125_v1 = vsel %vm1123_vm7, %v3579_v12, %v3630_v40  ;;  %v1124_v59 = vsel %vm1123_vm7, %v3630_v40, %v3587_v17 }
 0x1d3   :  { %v1134_v2 = vadd.f32 %v1124_v59, %v981_v13  ;;  %v1834_v59 = vld [vmem:[#allocation5 + $0x4] sm:$0x3] }
 0x1d5   :  { %v1269_v25 = vpop.permute.xlu1 %1268  ;;  %v3659_v27 = vpop.permute.xlu0 %1417 }
 0x1d6   :  { %v1280_v62 = vsel %vm1276_vm8, %v3583_v14, %v1269_v25  ;;  %v976_v14 = vsel %vm970_vm6, %v3577_v11, %v3567_v63 }
 0x1d7   :  { %v1284_v45 = vadd.f32 %v1280_v62, %v1131_v5  ;;  %v982_v54 = vadd.f32 %v976_v14, %v829_v53  ;;  %v1492_v53 = vsub.s32 4, %v3585_v15 }
 0x1d9   :  { %v1271_v39 = vpop.permute.xlu1 %1270  ;;  %v1422_v42 = vpop.permute.xlu0 %1421  ;;  %v1135_v28 = vadd.f32 %v1129_v9, %v982_v54 }
 0x1da   :  { %v1279_v47 = vsel %vm1276_vm8, %v1269_v25, %v1271_v39  ;;  %v980_v25 = vadd.f32 %v972_v41, %v827_v48  ;;  %v1278_v36 = vsel %vm1276_vm8, %v1271_v39, %v3614_v33 }
 0x1db   :  { %v1285_v18 = vadd.f32 %v1279_v47, %v1132_v37 }
 0x1dc   :  { %v1133_v30 = vadd.f32 %v1125_v1, %v980_v25 }
 0x1dd   :  { %v1424_v55 = vpop.permute.xlu0 %1423  ;;  %v1420_v35 = vpop.permute.xlu1 %1419 }
 0x1de   :  { %v1432_v6 = vsel %vm1429_vm9, %v1422_v42, %v1424_v55  ;;  %v1433_v56 = vsel %vm1429_vm9, %v1420_v35, %v1422_v42  ;;  %v1434_v63 = vsel %vm1429_vm9, %v3659_v27, %v1420_v35  ;;  %v1286_v3 = vadd.f32 %v1278_v36, %v1133_v30  ;;  %v2731_v30 = vld [vmem:[#allocation5 + $0x10] sm:$0x3] }
 0x1df   :  { %v1438_v11 = vadd.f32 %v1432_v6, %v1285_v18  ;;  %v1436_v20 = vadd.f32 %v1434_v63, %v1283_v46  ;;  %v1437_v23 = vadd.f32 %v1433_v56, %v1284_v45  ;;  %v1497_v46 = vrot.slane %v3596_v21, %v1496_v7 }
 0x1e0   :  { %v1489_v35 = vrot.slane %v3596_v21, %v1488_v26  ;;  %v1493_v6 = vrot.slane %v3596_v21, %v1492_v53 }
 0x1e1   :  { %v1450_v51 = vmul.f32 %v3522_v19, %v1438_v11  ;;  %v1448_v31 = vmul.f32 %v3522_v19, %v1436_v20  ;;  %v1449_v12 = vmul.f32 %v3522_v19, %v1437_v23  ;;  %v1275_v32 = vpop.permute.xlu1 %1274  ;;  %v1428_v43 = vpop.permute.xlu0 %1427 }
 0x1e2   :  { %v1282_v38 = vsel %vm1276_vm8, %v1275_v32, %v3600_v22  ;;  %v1277_v44 = vsel %vm1276_vm8, %v3614_v33, %v1275_v32  ;;  %v1435_v42 = vsel %vm1429_vm9, %v1428_v43, %v3659_v27  ;;  %v2426_v32 = vld [vmem:[#allocation5 + $0xc] sm:$0x3] }
 0x1e3   :  { %v1462_v17 = vadd.f32 %v3525_v24, %v1450_v51  ;;  %v1460_v40 = vadd.f32 %v3525_v24, %v1448_v31  ;;  %v1461_v57 = vadd.f32 %v3525_v24, %v1449_v12  ;;  %v1288_v61 = vadd.f32 %v1282_v38, %v1135_v28  ;;  %v1987_v51 = vld [vmem:[#allocation5 + $0x6] sm:$0x3]  ;;  %v2140_v31 = vld [vmem:[#allocation5 + $0x8] sm:$0x3]  ;;  %v2274_v12 = vld [vmem:[#allocation5 + $0xa] sm:$0x3] }
 0x1e4   :  { %v1287_v16 = vadd.f32 %v1277_v44, %v1134_v2  ;;  %v2579_v28 = vld [vmem:[#allocation5 + $0xe] sm:$0x3] }
 0x1e5   :  { %v1466_v39 = vmax.f32 %v1460_v40, 0.0  ;;  %v1467_v22 = vmax.f32 %v1461_v57, 0.0  ;;  %v1426_v10 = vpop.permute.xlu1 %1425  ;;  %v1441_v62 = vadd.f32 %v1435_v42, %v1288_v61  ;;  %v1468_v48 = vmax.f32 %v1462_v17, 0.0 }
 0x1e6   :  { %v1430_v47 = vsel %vm1429_vm9, %v1426_v10, %v1428_v43  ;;  %v1431_v33 = vsel %vm1429_vm9, %v1424_v55, %v1426_v10 }
 0x1e7   :  { %v1504_v58 = vmul.f32 %v3633_v49, %v1466_v39  ;;  %v1505_v5 = vmul.f32 %v1481_v60, %v1467_v22  ;;  %v1439_v37 = vadd.f32 %v1431_v33, %v1286_v3  ;;  %v1453_v50 = vmul.f32 %v3522_v19, %v1441_v62  ;;  %v1681_v60 = vld [vmem:[#allocation5 + $0x2] sm:$0x3] }
 0x1e8   :  { %v1440_v41 = vadd.f32 %v1430_v47, %v1287_v16  ;;  %v1506_v49 = vmul.f32 %v3617_v34, %v1468_v48 }
 0x1e9   :  { %v1510_v27 = vpack.c.bf16 %v1504_v58, %v1504_v58  ;;  %v3768_v52 = vpack.c.bf16 %v1505_v5, %v1505_v5  ;;  %v1451_v14 = vmul.f32 %v3522_v19, %v1439_v37  ;;  %v1465_v45 = vadd.f32 %v3525_v24, %v1453_v50 }
 0x1ea   :  { %v1452_v18 = vmul.f32 %v3522_v19, %v1440_v41  ;;  %v1516_v19 = vld [vmem:[#allocation5] sm:$0x3]  ;;  %v1512_v11 = vpack.c.bf16 %v1506_v49, %v1506_v49 }
 0x1eb   :  { %v3776_v55 = vsel %vm82_vm0, %v1510_v27, 0  ;;  %v1463_v15 = vadd.f32 %v3525_v24, %v1451_v14  ;;  %3029 = vmatprep.subr.msk.bf16.mxu1 %vm82_vm0, %v3768_v52  ;;  %v1471_v9 = vmax.f32 %v1465_v45, 0.0 }
 0x1ec   :  { %v1464_v56 = vadd.f32 %v3525_v24, %v1452_v18  ;;  %1539 = vmatpush1.bf16.msra.mxu1 %v3776_v55  ;;  %v3794_v24 = vsel %vm82_vm0, %v1512_v11, 0 }
 0x1ed   :  { %v1469_v63 = vmax.f32 %v1463_v15, 0.0  ;;  %v1509_v34 = vmul.f32 %v1497_v46, %v1471_v9 }
 0x1ee   :  { %v1470_v1 = vmax.f32 %v1464_v56, 0.0 }
 0x1ef   :  { %v1507_v20 = vmul.f32 %v1489_v35, %v1469_v63  ;;  %3030 = vmatmul.mubr.msk.bf16.vlgmr.msra.gmra.mrb[52].mxu1 %vm78_vm1, %v1516_v19  ;;  %v3786_v23 = vpack.c.bf16 %v1509_v34, %v1509_v34 }
 0x1f0   :  { %v1508_v25 = vmul.f32 %v1493_v6, %v1470_v1  ;;  %1652 = vmatprep.mubr.bf16.mxu1 %v3185_v0 }
 0x1f1   :  { %v3789_v13 = vpack.c.bf16 %v1507_v20, %v1507_v20  ;;  %3033 = vmatprep.subr.msk.bf16.mxu1 %vm82_vm0, %v3786_v23 }
 0x1f2   :  { %v1514_v21 = vpack.c.bf16 %v1508_v25, %v1508_v25 }
 0x1f3   :  { %3031 = vmatprep.subr.msk.bf16.mxu0 %vm82_vm0, %v3789_v13 }
 0x1f4   :  { %v3799_v54 = vsel %vm82_vm0, %v1514_v21, 0  ;;  %1580 = vmatpush1.bf16.msra.mxu0 %v3794_v24 }
 0x1f5   :  { %1621 = vmatpush1.bf16.msra.mxu1 %v3799_v54  ;;  %3035 = vmatprep.subr.msk.bf16.mxu0 %vm82_vm0, %v3768_v52 }
 0x1f6   :  { %3037 = vmatprep.subr.msk.bf16.mxu1 %vm82_vm0, %v3789_v13 }
 0x1f7   :  { %3032 = vmatmul.mubr.msk.bf16.vlgmr.msra.gmra.mrb[56].mxu0 %vm78_vm1, %v1516_v19 }
 0x1f8   :  { %3034 = vmatmul.mubr.msk.bf16.vlgmr.msra.gmra.mrb[56].mxu1 %vm78_vm1, %v1516_v19  ;;  %1686 = vmatpush1.bf16.msra.mxu0 %v3776_v55 }
 0x1f9   :  { %1727 = vmatpush1.bf16.msra.mxu1 %v3794_v24  ;;  %3039 = vmatprep.subr.msk.bf16.mxu0 %vm82_vm0, %v3786_v23 }
 0x1fa   :  { %3041 = vmatprep.subr.msk.bf16.mxu1 %vm82_vm0, %v3768_v52  ;;  %1717 = vmatprep.mubr.bf16.mxu0 %v3185_v0 }
 0x1fb   :  { %1758 = vmatprep.mubr.bf16.mxu1 %v3185_v0 }
 0x1ff   :  { %3036 = vmatmul.mubr.msk.bf16.vlgmr.msra.gmra.mrb[60].mxu0 %vm78_vm1, %v1681_v60 }
 0x200   :  { %3038 = vmatmul.mubr.msk.bf16.vlgmr.msra.gmra.mrb[60].mxu1 %vm78_vm1, %v1681_v60  ;;  %1768 = vmatpush1.bf16.msra.mxu0 %v3799_v54 }
 0x201   :  { %1839 = vmatpush1.bf16.msra.mxu1 %v3776_v55  ;;  %3043 = vmatprep.subr.msk.bf16.mxu0 %vm82_vm0, %v3789_v13 }
 0x202   :  { %3045 = vmatprep.subr.msk.bf16.mxu1 %vm82_vm0, %v3786_v23  ;;  %1799 = vmatprep.mubr.bf16.mxu0 %v3185_v0 }
 0x203   :  { %1870 = vmatprep.mubr.bf16.mxu1 %v3185_v0 }
 0x207   :  { %3040 = vmatmul.mubr.msk.bf16.vlgmr.msra.gmra.mrb[64].mxu0 %vm78_vm1, %v1681_v60 }
 0x208   :  { %3042 = vmatmul.mubr.msk.bf16.vlgmr.msra.gmra.mrb[64].mxu1 %vm78_vm1, %v1834_v59  ;;  %1880 = vmatpush1.bf16.msra.mxu0 %v3794_v24 }
 0x209   :  { %1921 = vmatpush1.bf16.msra.mxu1 %v3799_v54  ;;  %3047 = vmatprep.subr.msk.bf16.mxu0 %vm82_vm0, %v3768_v52 }
 0x20a   :  { %3049 = vmatprep.subr.msk.bf16.mxu1 %vm82_vm0, %v3789_v13  ;;  %1911 = vmatprep.mubr.bf16.mxu0 %v3185_v0 }
 0x20b   :  { %1952 = vmatprep.mubr.bf16.mxu1 %v3185_v0 }
 0x20f   :  { %3044 = vmatmul.mubr.msk.bf16.vlgmr.msra.gmra.mrb[68].mxu0 %vm78_vm1, %v1834_v59 }
 0x210   :  { %3046 = vmatmul.mubr.msk.bf16.vlgmr.msra.gmra.mrb[68].mxu1 %vm78_vm1, %v1834_v59  ;;  %1992 = vmatpush1.bf16.msra.mxu0 %v3776_v55 }
 0x211   :  { %2033 = vmatpush1.bf16.msra.mxu1 %v3794_v24  ;;  %3051 = vmatprep.subr.msk.bf16.mxu0 %vm82_vm0, %v3786_v23 }
 0x212   :  { %3053 = vmatprep.subr.msk.bf16.mxu1 %vm82_vm0, %v3768_v52  ;;  %2023 = vmatprep.mubr.bf16.mxu0 %v3185_v0 }
 0x213   :  { %2064 = vmatprep.mubr.bf16.mxu1 %v3185_v0 }
 0x217   :  { %3048 = vmatmul.mubr.msk.bf16.vlgmr.msra.gmra.mrb[72].mxu0 %vm78_vm1, %v1987_v51 }
 0x218   :  { %3050 = vmatmul.mubr.msk.bf16.vlgmr.msra.gmra.mrb[72].mxu1 %vm78_vm1, %v1987_v51  ;;  %2074 = vmatpush1.bf16.msra.mxu0 %v3799_v54 }
 0x219   :  { %2145 = vmatpush1.bf16.msra.mxu1 %v3776_v55  ;;  %3055 = vmatprep.subr.msk.bf16.mxu0 %vm82_vm0, %v3789_v13 }
 0x21a   :  { %3057 = vmatprep.subr.msk.bf16.mxu1 %vm82_vm0, %v3786_v23  ;;  %2105 = vmatprep.mubr.bf16.mxu0 %v3185_v0 }
 0x21b   :  { %2176 = vmatprep.mubr.bf16.mxu1 %v3185_v0 }
 0x21f   :  { %3052 = vmatmul.mubr.msk.bf16.vlgmr.msra.gmra.mrb[76].mxu0 %vm78_vm1, %v1987_v51 }
 0x220   :  { %3054 = vmatmul.mubr.msk.bf16.vlgmr.msra.gmra.mrb[76].mxu1 %vm78_vm1, %v2140_v31  ;;  %2186 = vmatpush1.bf16.msra.mxu0 %v3794_v24 }
 0x221   :  { %2227 = vmatpush1.bf16.msra.mxu1 %v3799_v54  ;;  %3059 = vmatprep.subr.msk.bf16.mxu0 %vm82_vm0, %v3768_v52 }
 0x222   :  { %3061 = vmatprep.subr.msk.bf16.mxu1 %vm82_vm0, %v3789_v13  ;;  %2217 = vmatprep.mubr.bf16.mxu0 %v3185_v0 }
 0x223   :  { %2258 = vmatprep.mubr.bf16.mxu1 %v3185_v0 }
 0x227   :  { %3056 = vmatmul.mubr.msk.bf16.vlgmr.msra.gmra.mrb[80].mxu0 %vm78_vm1, %v2140_v31 }
 0x228   :  { %3058 = vmatmul.mubr.msk.bf16.vlgmr.msra.gmra.mrb[80].mxu1 %vm78_vm1, %v2140_v31  ;;  %2279 = vmatpush1.bf16.msra.mxu0 %v3776_v55 }
 0x229   :  { %2320 = vmatpush1.bf16.msra.mxu1 %v3794_v24  ;;  %3063 = vmatprep.subr.msk.bf16.mxu0 %vm82_vm0, %v3786_v23 }
 0x22a   :  { %3065 = vmatprep.subr.msk.bf16.mxu1 %vm82_vm0, %v3768_v52  ;;  %2310 = vmatprep.mubr.bf16.mxu0 %v3185_v0 }
 0x22b   :  { %2351 = vmatprep.mubr.bf16.mxu1 %v3185_v0 }
 0x22f   :  { %3060 = vmatmul.mubr.msk.bf16.vlgmr.msra.gmra.mrb[84].mxu0 %vm78_vm1, %v2274_v12 }
 0x230   :  { %3062 = vmatmul.mubr.msk.bf16.vlgmr.msra.gmra.mrb[84].mxu1 %vm78_vm1, %v2274_v12  ;;  %2361 = vmatpush1.bf16.msra.mxu0 %v3799_v54 }
 0x231   :  { %2431 = vmatpush1.bf16.msra.mxu1 %v3776_v55  ;;  %3067 = vmatprep.subr.msk.bf16.mxu0 %vm82_vm0, %v3789_v13 }
 0x232   :  { %3069 = vmatprep.subr.msk.bf16.mxu1 %vm82_vm0, %v3786_v23  ;;  %2392 = vmatprep.mubr.bf16.mxu0 %v3185_v0 }
 0x233   :  { %2462 = vmatprep.mubr.bf16.mxu1 %v3185_v0 }
 0x237   :  { %3064 = vmatmul.mubr.msk.bf16.vlgmr.msra.gmra.mrb[88].mxu0 %vm78_vm1, %v2274_v12 }
 0x238   :  { %3066 = vmatmul.mubr.msk.bf16.vlgmr.msra.gmra.mrb[88].mxu1 %vm78_vm1, %v2426_v32  ;;  %2472 = vmatpush1.bf16.msra.mxu0 %v3794_v24 }
 0x239   :  { %2513 = vmatpush1.bf16.msra.mxu1 %v3799_v54  ;;  %3071 = vmatprep.subr.msk.bf16.mxu0 %vm82_vm0, %v3768_v52 }
 0x23a   :  { %3073 = vmatprep.subr.msk.bf16.mxu1 %vm82_vm0, %v3789_v13  ;;  %2503 = vmatprep.mubr.bf16.mxu0 %v3185_v0 }
 0x23b   :  { %2544 = vmatprep.mubr.bf16.mxu1 %v3185_v0 }
 0x23f   :  { %3068 = vmatmul.mubr.msk.bf16.vlgmr.msra.gmra.mrb[92].mxu0 %vm78_vm1, %v2426_v32 }
 0x240   :  { %3070 = vmatmul.mubr.msk.bf16.vlgmr.msra.gmra.mrb[92].mxu1 %vm78_vm1, %v2426_v32  ;;  %2584 = vmatpush1.bf16.msra.mxu0 %v3776_v55 }
 0x241   :  { %2625 = vmatpush1.bf16.msra.mxu1 %v3794_v24  ;;  %3075 = vmatprep.subr.msk.bf16.mxu0 %vm82_vm0, %v3786_v23 }
 0x242   :  { %3077 = vmatprep.subr.msk.bf16.mxu1 %vm82_vm0, %v3768_v52  ;;  %2615 = vmatprep.mubr.bf16.mxu0 %v3185_v0 }
 0x243   :  { %2656 = vmatprep.mubr.bf16.mxu1 %v3185_v0 }
 0x247   :  { %3072 = vmatmul.mubr.msk.bf16.vlgmr.msra.gmra.mrb[96].mxu0 %vm78_vm1, %v2579_v28 }
 0x248   :  { %3074 = vmatmul.mubr.msk.bf16.vlgmr.msra.gmra.mrb[96].mxu1 %vm78_vm1, %v2579_v28  ;;  %2666 = vmatpush1.bf16.msra.mxu0 %v3799_v54 }
 0x249   :  { %2736 = vmatpush1.bf16.msra.mxu1 %v3776_v55  ;;  %3079 = vmatprep.subr.msk.bf16.mxu0 %vm82_vm0, %v3789_v13 }
 0x24a   :  { %3081 = vmatprep.subr.msk.bf16.mxu1 %vm82_vm0, %v3786_v23  ;;  %2697 = vmatprep.mubr.bf16.mxu0 %v3185_v0 }
 0x24b   :  { %2767 = vmatprep.mubr.bf16.mxu1 %v3185_v0 }
 0x24f   :  { %3076 = vmatmul.mubr.msk.bf16.vlgmr.msra.gmra.mrb[100].mxu0 %vm78_vm1, %v2579_v28 }
 0x250   :  { %3078 = vmatmul.mubr.msk.bf16.vlgmr.msra.gmra.mrb[100].mxu1 %vm78_vm1, %v2731_v30  ;;  %2777 = vmatpush1.bf16.msra.mxu0 %v3794_v24 }
 0x251   :  { %2818 = vmatpush1.bf16.msra.mxu1 %v3799_v54  ;;  %2808 = vmatprep.mubr.bf16.mxu0 %v3185_v0 }
 0x252   :  { %2849 = vmatprep.mubr.bf16.mxu1 %v3185_v0 }
 0x257   :  { %3080 = vmatmul.mubr.msk.bf16.vlgmr.msra.gmra.mrb[104].mxu0 %vm78_vm1, %v2731_v30 }
 0x258   :  { %3082 = vmatmul.mubr.msk.bf16.vlgmr.msra.gmra.mrb[104].mxu1 %vm78_vm1, %v2731_v30 }
 0x2c2   :  { %v1572_v36 = vpop.f32.mrb[52].mxu1 }
 0x2c3   :  { %v1574_v38 = vpop.f32.mrb[53].mxu1  ;;  %1661 = vrot.lane.b32.xlu1 %v1572_v36, %s3194_s5 }
 0x2c4   :  { %1663 = vrot.lane.b32.xlu0 %v1574_v38, %s3194_s5  ;;  %v1576_v43 = vpop.f32.mrb[54].mxu1 }
 0x2c5   :  { %v1577_v17 = vpop.f32.mrb[55].mxu1 }
 0x2ca   :  { %v1613_v40 = vpop.f32.mrb[56].mxu0 }
 0x2cb   :  { %1665 = vrot.lane.b32.xlu1 %v1613_v40, %s3194_s5  ;;  %v1615_v57 = vpop.f32.mrb[57].mxu0  ;;  %v1654_v44 = vpop.f32.mrb[56].mxu1 }
 0x2cc   :  { %1667 = vrot.lane.b32.xlu0 %v1615_v57, %s3194_s5  ;;  %v1617_v2 = vpop.f32.mrb[58].mxu0  ;;  %v1656_v61 = vpop.f32.mrb[57].mxu1 }
 0x2cd   :  { %v1618_v7 = vpop.f32.mrb[59].mxu0  ;;  %v1658_v0 = vpop.f32.mrb[58].mxu1 }
 0x2ce   :  { %v1659_v26 = vpop.f32.mrb[59].mxu1 }
 0x2cf   :  { %1669 = vrot.lane.b32.xlu1 %v1654_v44, %s3194_s5 }
 0x2d0   :  { %1671 = vrot.lane.b32.xlu0 %v1656_v61, %s3194_s5 }
 0x2d2   :  { %v1719_v3 = vpop.f32.mrb[60].mxu0 }
 0x2d3   :  { %1808 = vrot.lane.b32.xlu1 %v1719_v3, %s3195_s13  ;;  %v1721_v39 = vpop.f32.mrb[61].mxu0  ;;  %v1760_v22 = vpop.f32.mrb[60].mxu1 }
 0x2d4   :  { %1810 = vrot.lane.b32.xlu0 %v1721_v39, %s3195_s13  ;;  %v1723_v42 = vpop.f32.mrb[62].mxu0  ;;  %v1762_v10 = vpop.f32.mrb[61].mxu1 }
 0x2d5   :  { %v1724_v16 = vpop.f32.mrb[63].mxu0  ;;  %v1764_v62 = vpop.f32.mrb[62].mxu1 }
 0x2d6   :  { %v1765_v47 = vpop.f32.mrb[63].mxu1 }
 0x2d7   :  { %1812 = vrot.lane.b32.xlu1 %v1760_v22, %s3195_s13 }
 0x2d8   :  { %1814 = vrot.lane.b32.xlu0 %v1762_v10, %s3195_s13 }
 0x2da   :  { %v1801_v33 = vpop.f32.mrb[64].mxu0 }
 0x2db   :  { %1816 = vrot.lane.b32.xlu1 %v1801_v33, %s3195_s13  ;;  %v1803_v48 = vpop.f32.mrb[65].mxu0  ;;  %v1872_v58 = vpop.f32.mrb[64].mxu1 }
 0x2dc   :  { %1818 = vrot.lane.b32.xlu0 %v1803_v48, %s3195_s13  ;;  %v1805_v5 = vpop.f32.mrb[66].mxu0  ;;  %v1874_v37 = vpop.f32.mrb[65].mxu1 }
 0x2dd   :  { %v1806_v50 = vpop.f32.mrb[67].mxu0  ;;  %v1876_v53 = vpop.f32.mrb[66].mxu1 }
 0x2de   :  { %v1877_v41 = vpop.f32.mrb[67].mxu1 }
 0x2df   :  { %1961 = vrot.lane.b32.xlu1 %v1872_v58, %s3196_s3 }
 0x2e0   :  { %1963 = vrot.lane.b32.xlu0 %v1874_v37, %s3196_s3 }
 0x2e2   :  { %v1913_v27 = vpop.f32.mrb[68].mxu0 }
 0x2e3   :  { %1965 = vrot.lane.b32.xlu1 %v1913_v27, %s3196_s3  ;;  %v1915_v52 = vpop.f32.mrb[69].mxu0  ;;  %v1954_v14 = vpop.f32.mrb[68].mxu1 }
 0x2e4   :  { %1967 = vrot.lane.b32.xlu0 %v1915_v52, %s3196_s3  ;;  %v1917_v46 = vpop.f32.mrb[70].mxu0  ;;  %v1956_v45 = vpop.f32.mrb[69].mxu1 }
 0x2e5   :  { %v1918_v18 = vpop.f32.mrb[71].mxu0  ;;  %v1958_v49 = vpop.f32.mrb[70].mxu1 }
 0x2e6   :  { %v1959_v55 = vpop.f32.mrb[71].mxu1 }
 0x2e7   :  { %1969 = vrot.lane.b32.xlu1 %v1954_v14, %s3196_s3 }
 0x2e8   :  { %1971 = vrot.lane.b32.xlu0 %v1956_v45, %s3196_s3 }
 0x2ea   :  { %v2025_v35 = vpop.f32.mrb[72].mxu0 }
 0x2eb   :  { %2114 = vrot.lane.b32.xlu1 %v2025_v35, %s3197_s14  ;;  %v2027_v15 = vpop.f32.mrb[73].mxu0  ;;  %v2066_v9 = vpop.f32.mrb[72].mxu1 }
 0x2ec   :  { %2116 = vrot.lane.b32.xlu0 %v2027_v15, %s3197_s14  ;;  %v2029_v6 = vpop.f32.mrb[74].mxu0  ;;  %v2068_v56 = vpop.f32.mrb[73].mxu1 }
 0x2ed   :  { %v2030_v19 = vpop.f32.mrb[75].mxu0  ;;  %v2070_v63 = vpop.f32.mrb[74].mxu1 }
 0x2ee   :  { %v2071_v34 = vpop.f32.mrb[75].mxu1  ;;  %v3951_v6 = vpop.permute.xlu1 %2885 }
 0x2ef   :  { %2118 = vrot.lane.b32.xlu1 %v2066_v9, %s3197_s14 }
 0x2f0   :  { %2120 = vrot.lane.b32.xlu0 %v2068_v56, %s3197_s14  ;;  %v3953_v56 = vpop.permute.xlu0 %2897 }
 0x2f2   :  { %v2107_v1 = vpop.f32.mrb[76].mxu0 }
 0x2f3   :  { %2122 = vrot.lane.b32.xlu1 %v2107_v1, %s3197_s14  ;;  %v2109_v11 = vpop.f32.mrb[77].mxu0  ;;  %v3925_v20 = vpop.f32.mrb[76].mxu1 }
 0x2f4   :  { %2124 = vrot.lane.b32.xlu0 %v2109_v11, %s3197_s14  ;;  %v2111_v23 = vpop.f32.mrb[78].mxu0  ;;  %v3927_v25 = vpop.f32.mrb[77].mxu1 }
 0x2f5   :  { %v2112_v13 = vpop.f32.mrb[79].mxu0  ;;  %v2182_v21 = vpop.f32.mrb[78].mxu1 }
 0x2f6   :  { %v2183_v24 = vpop.f32.mrb[79].mxu1 }
 0x2f7   :  { %v3957_v24 = vpop.permute.xlu1 %2906 }
 0x2fa   :  { %v3929_v54 = vpop.f32.mrb[80].mxu0 }
 0x2fb   :  { %v3931_v60 = vpop.f32.mrb[81].mxu0  ;;  %v3933_v59 = vpop.f32.mrb[80].mxu1 }
 0x2fc   :  { %v2223_v51 = vpop.f32.mrb[82].mxu0  ;;  %v3935_v31 = vpop.f32.mrb[81].mxu1 }
 0x2fd   :  { %v2224_v12 = vpop.f32.mrb[83].mxu0  ;;  %v2264_v32 = vpop.f32.mrb[82].mxu1 }
 0x2fe   :  { %v2265_v28 = vpop.f32.mrb[83].mxu1  ;;  %v3961_v51 = vpop.permute.xlu0 %2908  ;;  %v3107_v12 = vld [vmem:[#allocation2 + $0x8] sm:$0xff] }
 0x302   :  { %v2312_v30 = vpop.f32.mrb[84].mxu0 }
 0x303   :  { %2401 = vrot.lane.b32.xlu1 %v2312_v30, %s3186_s0  ;;  %v2314_v36 = vpop.f32.mrb[85].mxu0  ;;  %v2353_v38 = vpop.f32.mrb[84].mxu1 }
 0x304   :  { %2403 = vrot.lane.b32.xlu0 %v2314_v36, %s3186_s0  ;;  %v2316_v43 = vpop.f32.mrb[86].mxu0  ;;  %v2355_v17 = vpop.f32.mrb[85].mxu1  ;;  %v3108_v36 = vld [vmem:[#allocation2 + $0x10] sm:$0xff] }
 0x305   :  { %v2317_v40 = vpop.f32.mrb[87].mxu0  ;;  %v2357_v57 = vpop.f32.mrb[86].mxu1 }
 0x306   :  { %v2358_v44 = vpop.f32.mrb[87].mxu1 }
 0x307   :  { %2405 = vrot.lane.b32.xlu1 %v2353_v38, %s3186_s0 }
 0x308   :  { %2407 = vrot.lane.b32.xlu0 %v2355_v17, %s3186_s0 }
 0x30a   :  { %v2394_v2 = vpop.f32.mrb[88].mxu0 }
 0x30b   :  { %2409 = vrot.lane.b32.xlu1 %v2394_v2, %s3186_s0  ;;  %v2396_v61 = vpop.f32.mrb[89].mxu0  ;;  %v2464_v7 = vpop.f32.mrb[88].mxu1 }
 0x30c   :  { %2411 = vrot.lane.b32.xlu0 %v2396_v61, %s3186_s0  ;;  %v2398_v0 = vpop.f32.mrb[90].mxu0  ;;  %v2466_v26 = vpop.f32.mrb[89].mxu1 }
 0x30d   :  { %v2399_v3 = vpop.f32.mrb[91].mxu0  ;;  %v2468_v39 = vpop.f32.mrb[90].mxu1 }
 0x30e   :  { %v2469_v22 = vpop.f32.mrb[91].mxu1 }
 0x30f   :  { %2553 = vrot.lane.b32.xlu1 %v2464_v7, %s3198_s15 }
 0x310   :  { %2555 = vrot.lane.b32.xlu0 %v2466_v26, %s3198_s15 }
 0x312   :  { %v2505_v42 = vpop.f32.mrb[92].mxu0 }
 0x313   :  { %2557 = vrot.lane.b32.xlu1 %v2505_v42, %s3198_s15  ;;  %v2507_v10 = vpop.f32.mrb[93].mxu0  ;;  %v2546_v16 = vpop.f32.mrb[92].mxu1 }
 0x314   :  { %2559 = vrot.lane.b32.xlu0 %v2507_v10, %s3198_s15  ;;  %v2509_v62 = vpop.f32.mrb[94].mxu0  ;;  %v2548_v47 = vpop.f32.mrb[93].mxu1 }
 0x315   :  { %v2510_v33 = vpop.f32.mrb[95].mxu0  ;;  %v2550_v48 = vpop.f32.mrb[94].mxu1 }
 0x316   :  { %v2551_v58 = vpop.f32.mrb[95].mxu1 }
 0x317   :  { %2561 = vrot.lane.b32.xlu1 %v2546_v16, %s3198_s15 }
 0x318   :  { %2563 = vrot.lane.b32.xlu0 %v2548_v47, %s3198_s15 }
 0x31a   :  { %v2617_v5 = vpop.f32.mrb[96].mxu0 }
 0x31b   :  { %v2619_v37 = vpop.f32.mrb[97].mxu0  ;;  %v2658_v50 = vpop.f32.mrb[96].mxu1 }
 0x31c   :  { %2706 = vrot.lane.b32.xlu0 %v2617_v5, %s3188_s27  ;;  %2708 = vrot.lane.b32.xlu1 %v2619_v37, %s3188_s27  ;;  %v2621_v53 = vpop.f32.mrb[98].mxu0  ;;  %v2660_v41 = vpop.f32.mrb[97].mxu1 }
 0x31d   :  { %v2622_v27 = vpop.f32.mrb[99].mxu0  ;;  %v2662_v52 = vpop.f32.mrb[98].mxu1 }
 0x31e   :  { %v2663_v14 = vpop.f32.mrb[99].mxu1 }
 0x320   :  { %2710 = vrot.lane.b32.xlu0 %v2658_v50, %s3188_s27  ;;  %2712 = vrot.lane.b32.xlu1 %v2660_v41, %s3188_s27 }
 0x322   :  { %v2699_v46 = vpop.f32.mrb[100].mxu0 }
 0x323   :  { %v2701_v45 = vpop.f32.mrb[101].mxu0  ;;  %v2769_v18 = vpop.f32.mrb[100].mxu1 }
 0x324   :  { %2714 = vrot.lane.b32.xlu0 %v2699_v46, %s3188_s27  ;;  %2716 = vrot.lane.b32.xlu1 %v2701_v45, %s3188_s27  ;;  %v2703_v49 = vpop.f32.mrb[102].mxu0  ;;  %v2771_v55 = vpop.f32.mrb[101].mxu1 }
 0x325   :  { %v2704_v35 = vpop.f32.mrb[103].mxu0  ;;  %v2773_v15 = vpop.f32.mrb[102].mxu1 }
 0x326   :  { %v2774_v9 = vpop.f32.mrb[103].mxu1 }
 0x328   :  { %2860 = vrot.lane.b32.xlu0 %v2771_v55, %s3189_s28  ;;  %2858 = vrot.lane.b32.xlu1 %v2769_v18, %s3189_s28 }
 0x32a   :  { %v2810_v19 = vpop.f32.mrb[104].mxu0 }
 0x32b   :  { %v2812_v63 = vpop.f32.mrb[105].mxu0  ;;  %v2851_v34 = vpop.f32.mrb[104].mxu1 }
 0x32c   :  { %2862 = vrot.lane.b32.xlu1 %v2810_v19, %s3189_s28  ;;  %2864 = vrot.lane.b32.xlu0 %v2812_v63, %s3189_s28  ;;  %v2814_v1 = vpop.f32.mrb[106].mxu0  ;;  %v2853_v11 = vpop.f32.mrb[105].mxu1 }
 0x32d   :  { %v2815_v23 = vpop.f32.mrb[107].mxu0  ;;  %v2855_v13 = vpop.f32.mrb[106].mxu1 }
 0x32e   :  { %v2856_v21 = vpop.f32.mrb[107].mxu1 }
 0x330   :  { %2866 = vrot.lane.b32.xlu1 %v2851_v34, %s3189_s28  ;;  %2868 = vrot.lane.b32.xlu0 %v2853_v11, %s3189_s28 }
 0x334   :  { %2910 = vrot.lane.b32.xlu1 %v3107_v12, %s3189_s28  ;;  %2912 = vrot.lane.b32.xlu0 %v3286_v4, %s3189_s28 }
 0x335   :  { %v1662_v32 = vpop.permute.xlu1 %1661 }
 0x336   :  { %v1664_v28 = vpop.permute.xlu0 %1663 }
 0x337   :  { %v1678_v30 = vsel %vm1673_vm10, %v1662_v32, %v1664_v28 }
 0x338   :  { %2914 = vrot.lane.b32.xlu1 %v3108_v36, %s3189_s28  ;;  %2916 = vrot.lane.b32.xlu0 %v3290_v8, %s3189_s28 }
 0x33d   :  { %v1666_v38 = vpop.permute.xlu1 %1665 }
 0x33e   :  { %v1677_v43 = vsel %vm1673_vm10, %v1664_v28, %v1666_v38  ;;  %v1668_v17 = vpop.permute.xlu0 %1667 }
 0x33f   :  { %v1676_v40 = vsel %vm1673_vm10, %v1666_v38, %v1668_v17 }
 0x341   :  { %v1670_v57 = vpop.permute.xlu1 %1669 }
 0x342   :  { %v1675_v44 = vsel %vm1673_vm10, %v1668_v17, %v1670_v57  ;;  %v1672_v2 = vpop.permute.xlu0 %1671 }
 0x343   :  { %v1674_v61 = vsel %vm1673_vm10, %v1670_v57, %v1672_v2  ;;  %v1679_v4 = vsel %vm1673_vm10, %v1672_v2, %v1662_v32 }
 0x345   :  { %v1809_v7 = vpop.permute.xlu1 %1808 }
 0x346   :  { %v1811_v0 = vpop.permute.xlu0 %1810 }
 0x347   :  { %v1825_v26 = vsel %vm1820_vm11, %v1809_v7, %v1811_v0 }
 0x348   :  { %v1828_v3 = vadd.f32 %v1825_v26, %v1678_v30 }
 0x349   :  { %v1813_v39 = vpop.permute.xlu1 %1812 }
 0x34a   :  { %v1824_v8 = vsel %vm1820_vm11, %v1811_v0, %v1813_v39  ;;  %v1815_v22 = vpop.permute.xlu0 %1814 }
 0x34b   :  { %v1829_v42 = vadd.f32 %v1824_v8, %v1677_v43  ;;  %v1823_v10 = vsel %vm1820_vm11, %v1813_v39, %v1815_v22 }
 0x34c   :  { %v1830_v16 = vadd.f32 %v1823_v10, %v1676_v40 }
 0x34d   :  { %v1817_v62 = vpop.permute.xlu1 %1816 }
 0x34e   :  { %v1822_v47 = vsel %vm1820_vm11, %v1815_v22, %v1817_v62  ;;  %v1819_v33 = vpop.permute.xlu0 %1818 }
 0x34f   :  { %v1831_v48 = vadd.f32 %v1822_v47, %v1675_v44  ;;  %v1826_v58 = vsel %vm1820_vm11, %v1819_v33, %v1809_v7  ;;  %v1821_v9 = vsel %vm1820_vm11, %v1817_v62, %v1819_v33 }
 0x350   :  { %v1827_v5 = vadd.f32 %v1826_v58, %v1679_v4  ;;  %v1832_v30 = vadd.f32 %v1821_v9, %v1674_v61 }
 0x351   :  { %v1962_v37 = vpop.permute.xlu1 %1961 }
 0x352   :  { %v1964_v50 = vpop.permute.xlu0 %1963 }
 0x353   :  { %v1978_v14 = vsel %vm1973_vm12, %v1962_v37, %v1964_v50 }
 0x354   :  { %v1981_v45 = vadd.f32 %v1978_v14, %v1828_v3 }
 0x355   :  { %v1966_v53 = vpop.permute.xlu1 %1965 }
 0x356   :  { %v1968_v41 = vpop.permute.xlu0 %1967  ;;  %v1977_v18 = vsel %vm1973_vm12, %v1964_v50, %v1966_v53 }
 0x357   :  { %v1976_v55 = vsel %vm1973_vm12, %v1966_v53, %v1968_v41  ;;  %v1982_v19 = vadd.f32 %v1977_v18, %v1829_v42 }
 0x358   :  { %v1983_v34 = vadd.f32 %v1976_v55, %v1830_v16 }
 0x359   :  { %v1970_v27 = vpop.permute.xlu1 %1969 }
 0x35a   :  { %v1972_v52 = vpop.permute.xlu0 %1971  ;;  %v1975_v1 = vsel %vm1973_vm12, %v1968_v41, %v1970_v27 }
 0x35b   :  { %v1974_v21 = vsel %vm1973_vm12, %v1970_v27, %v1972_v52  ;;  %v1979_v12 = vsel %vm1973_vm12, %v1972_v52, %v1962_v37  ;;  %v1984_v38 = vadd.f32 %v1975_v1, %v1831_v48 }
 0x35c   :  { %v1980_v40 = vadd.f32 %v1979_v12, %v1827_v5  ;;  %v1985_v57 = vadd.f32 %v1974_v21, %v1832_v30 }
 0x35d   :  { %v2115_v46 = vpop.permute.xlu1 %2114 }
 0x35e   :  { %v2117_v49 = vpop.permute.xlu0 %2116 }
 0x35f   :  { %v2131_v35 = vsel %vm2126_vm13, %v2115_v46, %v2117_v49 }
 0x360   :  { %v2134_v15 = vadd.f32 %v2131_v35, %v1981_v45 }
 0x361   :  { %v2119_v63 = vpop.permute.xlu1 %2118 }
 0x362   :  { %v2130_v11 = vsel %vm2126_vm13, %v2117_v49, %v2119_v63  ;;  %v2121_v23 = vpop.permute.xlu0 %2120  ;;  %v2268_v13 = vadd.f32 %v3927_v25, %v2134_v15 }
 0x363   :  { %v2135_v32 = vadd.f32 %v2130_v11, %v1982_v19  ;;  %v2129_v28 = vsel %vm2126_vm13, %v2119_v63, %v2121_v23 }
 0x364   :  { %v2136_v36 = vadd.f32 %v2129_v28, %v1983_v34 }
 0x365   :  { %v2123_v43 = vpop.permute.xlu1 %2122  ;;  %v2269_v17 = vadd.f32 %v3929_v54, %v2135_v32 }
 0x366   :  { %v2128_v25 = vsel %vm2126_vm13, %v2121_v23, %v2123_v43  ;;  %v2125_v44 = vpop.permute.xlu0 %2124  ;;  %v2270_v2 = vadd.f32 %v3931_v60, %v2136_v36 }
 0x367   :  { %v2137_v4 = vadd.f32 %v2128_v25, %v1984_v38  ;;  %v2127_v7 = vsel %vm2126_vm13, %v2123_v43, %v2125_v44  ;;  %v2132_v61 = vsel %vm2126_vm13, %v2125_v44, %v2115_v46 }
 0x368   :  { %v2133_v0 = vadd.f32 %v2132_v61, %v1980_v40  ;;  %v2138_v26 = vadd.f32 %v2127_v7, %v1985_v57 }
 0x369   :  { %v2271_v3 = vadd.f32 %v3933_v59, %v2137_v4 }
 0x36a   :  { %v2267_v54 = vadd.f32 %v3925_v20, %v2133_v0  ;;  %v2272_v39 = vadd.f32 %v3935_v31, %v2138_v26 }
 0x375   :  { %v2402_v8 = vpop.permute.xlu1 %2401 }
 0x376   :  { %v2404_v22 = vpop.permute.xlu0 %2403 }
 0x377   :  { %v2417_v31 = vsel %vm238_vm2, %v2402_v8, %v2404_v22 }
 0x378   :  { %v2419_v41 = vadd.f32 %v2417_v31, %v2267_v54 }
 0x379   :  { %v2406_v42 = vpop.permute.xlu1 %2405 }
 0x37a   :  { %v2408_v10 = vpop.permute.xlu0 %2407  ;;  %v2416_v27 = vsel %vm238_vm2, %v2404_v22, %v2406_v42 }
 0x37b   :  { %v2415_v46 = vsel %vm238_vm2, %v2406_v42, %v2408_v10  ;;  %v2420_v55 = vadd.f32 %v2416_v27, %v2268_v13 }
 0x37c   :  { %v2421_v19 = vadd.f32 %v2415_v46, %v2269_v17 }
 0x37d   :  { %v2410_v60 = vpop.permute.xlu1 %2409 }
 0x37e   :  { %v2412_v16 = vpop.permute.xlu0 %2411  ;;  %v2414_v18 = vsel %vm238_vm2, %v2408_v10, %v2410_v60 }
 0x37f   :  { %v2413_v35 = vsel %vm238_vm2, %v2410_v60, %v2412_v16  ;;  %v2418_v63 = vsel %vm238_vm2, %v2412_v16, %v2402_v8  ;;  %v2422_v13 = vadd.f32 %v2414_v18, %v2270_v2 }
 0x380   :  { %v2423_v28 = vadd.f32 %v2413_v35, %v2271_v3  ;;  %v2424_v43 = vadd.f32 %v2418_v63, %v2272_v39 }
 0x381   :  { %v2554_v62 = vpop.permute.xlu1 %2553 }
 0x382   :  { %v2556_v47 = vpop.permute.xlu0 %2555 }
 0x383   :  { %v2570_v53 = vsel %vm2565_vm14, %v2554_v62, %v2556_v47 }
 0x384   :  { %v2572_v49 = vadd.f32 %v2570_v53, %v2419_v41 }
 0x385   :  { %v2558_v33 = vpop.permute.xlu1 %2557 }
 0x386   :  { %v2560_v48 = vpop.permute.xlu0 %2559  ;;  %v2569_v15 = vsel %vm2565_vm14, %v2556_v47, %v2558_v33 }
 0x387   :  { %v2568_v9 = vsel %vm2565_vm14, %v2558_v33, %v2560_v48  ;;  %v2573_v30 = vadd.f32 %v2569_v15, %v2420_v55 }
 0x388   :  { %v2574_v36 = vadd.f32 %v2568_v9, %v2421_v19 }
 0x389   :  { %v2562_v58 = vpop.permute.xlu1 %2561 }
 0x38a   :  { %v2564_v5 = vpop.permute.xlu0 %2563  ;;  %v2567_v34 = vsel %vm2565_vm14, %v2560_v48, %v2562_v58 }
 0x38b   :  { %v2575_v17 = vadd.f32 %v2567_v34, %v2422_v13  ;;  %v2566_v40 = vsel %vm2565_vm14, %v2562_v58, %v2564_v5  ;;  %v2571_v57 = vsel %vm2565_vm14, %v2564_v5, %v2554_v62 }
 0x38c   :  { %v2576_v39 = vadd.f32 %v2566_v40, %v2423_v28  ;;  %v2577_v8 = vadd.f32 %v2571_v57, %v2424_v43 }
 0x38e   :  { %v2707_v37 = vpop.permute.xlu0 %2706  ;;  %v2709_v50 = vpop.permute.xlu1 %2708 }
 0x38f   :  { %v2722_v45 = vsel %vm664_vm4, %v2707_v37, %v2709_v50 }
 0x390   :  { %v2724_v1 = vadd.f32 %v2722_v45, %v2572_v49 }
 0x392   :  { %v2711_v59 = vpop.permute.xlu0 %2710  ;;  %v2713_v20 = vpop.permute.xlu1 %2712 }
 0x393   :  { %v2721_v21 = vsel %vm664_vm4, %v2709_v50, %v2711_v59  ;;  %v2720_v12 = vsel %vm664_vm4, %v2711_v59, %v2713_v20  ;;  %v2922_v59 = vsel %vm817_vm5, %v3957_v24, %v3961_v51 }
 0x394   :  { %v2725_v25 = vadd.f32 %v2721_v21, %v2573_v30  ;;  %v2726_v44 = vadd.f32 %v2720_v12, %v2574_v36 }
 0x396   :  { %v2715_v52 = vpop.permute.xlu0 %2714  ;;  %v2717_v14 = vpop.permute.xlu1 %2716 }
 0x397   :  { %v2719_v2 = vsel %vm664_vm4, %v2713_v20, %v2715_v52  ;;  %v2718_v0 = vsel %vm664_vm4, %v2715_v52, %v2717_v14  ;;  %v2723_v26 = vsel %vm664_vm4, %v2717_v14, %v2707_v37 }
 0x398   :  { %v2727_v60 = vadd.f32 %v2719_v2, %v2575_v17  ;;  %v2728_v16 = vadd.f32 %v2718_v0, %v2576_v39  ;;  %v2729_v62 = vadd.f32 %v2723_v26, %v2577_v8 }
 0x39a   :  { %v2861_v11 = vpop.permute.xlu0 %2860  ;;  %v2859_v23 = vpop.permute.xlu1 %2858 }
 0x39b   :  { %v2874_v32 = vsel %vm817_vm5, %v2859_v23, %v2861_v11 }
 0x39c   :  { %v2876_v38 = vadd.f32 %v2874_v32, %v2724_v1 }
 0x39e   :  { %v2888_v4 = vmul.f32 %v3951_v6, %v2876_v38  ;;  %v2863_v7 = vpop.permute.xlu1 %2862  ;;  %v2865_v61 = vpop.permute.xlu0 %2864 }
 0x39f   :  { %v2873_v3 = vsel %vm817_vm5, %v2861_v11, %v2863_v7  ;;  %v2872_v54 = vsel %vm817_vm5, %v2863_v7, %v2865_v61 }
 0x3a0   :  { %v2877_v22 = vadd.f32 %v2873_v3, %v2725_v25  ;;  %v2878_v42 = vadd.f32 %v2872_v54, %v2726_v44  ;;  %v2900_v10 = vadd.f32 %v3953_v56, %v2888_v4 }
 0x3a2   :  { %v2889_v47 = vmul.f32 %v3951_v6, %v2877_v22  ;;  %v2867_v33 = vpop.permute.xlu1 %2866  ;;  %v2869_v48 = vpop.permute.xlu0 %2868  ;;  %v2890_v58 = vmul.f32 %v3951_v6, %v2878_v42  ;;  %v2924_v41 = vadd.f32 %v2922_v59, %v2900_v10 }
 0x3a3   :  { %v2871_v5 = vsel %vm817_vm5, %v2865_v61, %v2867_v33  ;;  %v2870_v37 = vsel %vm817_vm5, %v2867_v33, %v2869_v48  ;;  %v2875_v50 = vsel %vm817_vm5, %v2869_v48, %v2859_v23 }
 0x3a4   :  { %v2879_v20 = vadd.f32 %v2871_v5, %v2727_v60  ;;  %v2880_v31 = vadd.f32 %v2870_v37, %v2728_v16  ;;  %v2881_v53 = vadd.f32 %v2875_v50, %v2729_v62  ;;  %v2901_v46 = vadd.f32 %v3953_v56, %v2889_v47 }
 0x3a5   :  { %v2902_v55 = vadd.f32 %v3953_v56, %v2890_v58  ;;  %v2930_v9 = vmax.f32 %v2924_v41, 0.0 }
 0x3a6   :  { %v2891_v27 = vmul.f32 %v3951_v6, %v2879_v20  ;;  %v2892_v52 = vmul.f32 %v3951_v6, %v2880_v31  ;;  %v2893_v14 = vmul.f32 %v3951_v6, %v2881_v53  ;;  %v2911_v45 = vpop.permute.xlu1 %2910  ;;  %v2913_v18 = vpop.permute.xlu0 %2912 }
 0x3a7   :  { %v2921_v49 = vsel %vm817_vm5, %v3961_v51, %v2911_v45  ;;  %v2920_v35 = vsel %vm817_vm5, %v2911_v45, %v2913_v18 }
 0x3a8   :  { %v2925_v15 = vadd.f32 %v2921_v49, %v2901_v46  ;;  %v2926_v19 = vadd.f32 %v2920_v35, %v2902_v55  ;;  %v2903_v6 = vadd.f32 %v3953_v56, %v2891_v27  ;;  %v2904_v1 = vadd.f32 %v3953_v56, %v2892_v52 }
 0x3a9   :  { %v2905_v11 = vadd.f32 %v3953_v56, %v2893_v14 }
 0x3aa   :  { %v2931_v63 = vmax.f32 %v2925_v15, 0.0  ;;  %v2915_v34 = vpop.permute.xlu1 %2914  ;;  %v2917_v23 = vpop.permute.xlu0 %2916  ;;  %v2932_v36 = vmax.f32 %v2926_v19, 0.0 }
 0x3ab   :  { %v2919_v51 = vsel %vm817_vm5, %v2913_v18, %v2915_v34  ;;  %v2918_v13 = vsel %vm817_vm5, %v2915_v34, %v2917_v23  ;;  %v2923_v21 = vsel %vm817_vm5, %v2917_v23, %v3957_v24 }
 0x3ac   :  { %v2942_v12 = vcombine.low %v2930_v9, %v2931_v63  ;;  %v2927_v32 = vadd.f32 %v2919_v51, %v2903_v6  ;;  %v2928_v28 = vadd.f32 %v2918_v13, %v2904_v1  ;;  %v2929_v30 = vadd.f32 %v2923_v21, %v2905_v11 }
 0x3ae   :  { %2948 = vst [vmem:[#allocation7] sm:$0xff] %v2942_v12  ;;  %v2933_v56 = vmax.f32 %v2927_v32, 0.0  ;;  %v2934_v38 = vmax.f32 %v2928_v28, 0.0  ;;  %v2935_v43 = vmax.f32 %v2929_v30, 0.0 }
 0x3b0   :  { %v2943_v17 = vcombine.low %v2932_v36, %v2933_v56  ;;  %v2944_v40 = vcombine.low %v2934_v38, %v2935_v43 }
 0x3b2   :  { %2949 = vst [vmem:[#allocation7 + $0x8] sm:$0xff] %v2943_v17  ;;  %2950 = vst [vmem:[#allocation7 + $0x10] sm:$0xff] %v2944_v40 }
 0x3b3   :  { %3164 = shalt.err (!%p3161_p6)
}
 0x3b4   :  { %s3165_s21 = scalar_lea.hbm %s4112_s8, 384 }
 0x3b5   :  { %p3166_p7 = scmp.ne.s32.totalorder %s4112_s8, %s3165_s21  ;;  %p3169_p8 = scmp.lt.u32.totalorder %s3165_s21, %s4112_s8 }
 0x3b7   :  { %p3171_p9 = pnand %p3169_p8, %p3166_p7 }
 0x3b9   :  { %3174 = shalt.err (!%p3171_p9)
}
 0x3ba   :  { %2960 = dma.vmem_to_hbm [thread:$0]  %s2958_s17, 384, %s4112_s8, [#allocation4]  }
 0x3bb   :  { %3179 = dma.done.wait [#allocation4], 384  }
 0x3bc   :  { %3180 = vsyncadd [#allocation4], 4294966912 }
 0x3bd   :  { %2964 = vsyncpa [#allocation3], 1 }
 0x3be   :  { %2965 = vsyncpa [#allocation6], 1 }
 0x3bf   :  { %2966 = vsyncpa [#allocation4], 1 }

</bundles_post_ra>
